<compile_context>
chip_gen: v7x
topology: tpu7x:2x2x1
jax: 0.10.0
libtpu: 0.0.40
codegen_flags: <defaults>
</compile_context>

<pallas_src>
import functools
import math

import jax
import jax.numpy as jnp
import numpy as np
from jax.experimental import pallas as pl
from jax.experimental.pallas import tpu as pltpu

LN_EPS = 1e-5


def _gelu_tanh(x):
    # TODO(synk): the FeedForward class is not shown in the reference; we assume
    # the standard GPT-style MLP Linear(D,4D) -> GELU(tanh approx) -> Linear(4D,D).
    return 0.5 * x * (1.0 + jnp.tanh(jnp.sqrt(2.0 / jnp.pi) * (x + 0.044715 * x * x * x)))


def _layernorm(x, g, b):
    mu = jnp.mean(x, axis=-1, keepdims=True)
    var = jnp.mean((x - mu) ** 2, axis=-1, keepdims=True)
    return (x - mu) * jax.lax.rsqrt(var + LN_EPS) * g + b


def _transformer_block_kernel(
    num_heads, seq_len,
    x_ref,                       # (M, D)  with M = TN * L rows (TN independent rows, L attn positions)
    g1_ref, b1_ref,              # (1, D)  norm1 gamma / beta (f32)
    wq_ref, wk_ref, wv_ref,      # (D, D)  bf16, pre-transposed (in,out); 1/sqrt(Dh) folded into wq
    bq_ref, bk_ref, bv_ref,      # (1, D)  f32; scale folded into bq
    wo_ref, bo_ref,              # (D, D)  bf16, (1, D) f32
    g2_ref, b2_ref,              # (1, D)  norm2 gamma / beta (f32)
    w1_ref, bf1_ref,             # (D, 4D) bf16, (1, 4D) f32
    w2_ref, bf2_ref,             # (4D, D) bf16, (1, D) f32
    o_ref,                       # (M, D)
    oheads_ref,                  # VMEM scratch (M, D) bf16: concatenated head outputs
):
    f32 = jnp.float32
    bf16 = jnp.bfloat16
    M, D = x_ref.shape
    L = seq_len
    TN = M // L
    H = num_heads
    Dh = D // H

    x = x_ref[...].astype(f32)                                   # (M, D) f32

    # --- norm1 + multi-head self-attention (attention mixes the L axis) ---
    h1 = _layernorm(x, g1_ref[...], b1_ref[...])
    h1b = h1.astype(bf16)

    q = jnp.dot(h1b, wq_ref[...], preferred_element_type=f32) + bq_ref[...]
    k = jnp.dot(h1b, wk_ref[...], preferred_element_type=f32) + bk_ref[...]
    v = jnp.dot(h1b, wv_ref[...], preferred_element_type=f32) + bv_ref[...]

    for h in range(H):                                           # static unroll over heads
        sl = slice(h * Dh, (h + 1) * Dh)
        qh = q[:, sl].reshape(TN, L, Dh).astype(bf16)
        kh = k[:, sl].reshape(TN, L, Dh).astype(bf16)
        vh = v[:, sl].reshape(TN, L, Dh).astype(bf16)
        # scores: batched over the TN independent rows, contract Dh (lane dims)
        s = jax.lax.dot_general(
            qh, kh, (((2,), (2,)), ((0,), (0,))),
            preferred_element_type=f32)                          # (TN, L, L)
        s = s - jnp.max(s, axis=-1, keepdims=True)
        p = jnp.exp(s)
        p = p * pl.reciprocal(jnp.sum(p, axis=-1, keepdims=True), approx=True)
        oh = jax.lax.dot_general(
            p.astype(bf16), vh, (((2,), (1,)), ((0,), (0,))),
            preferred_element_type=f32)                          # (TN, L, Dh)
        # drop the head output into the scratch at its static lane offset
        oheads_ref[:, sl] = oh.reshape(M, Dh).astype(bf16)

    attn = jnp.dot(oheads_ref[...], wo_ref[...],
                   preferred_element_type=f32) + bo_ref[...]     # (M, D) f32
    # TODO(synk): attention dropout / drop_shortcut are identity at inference.

    x2 = x + attn

    # --- norm2 + feed-forward ---
    h2 = _layernorm(x2, g2_ref[...], b2_ref[...])
    f = _gelu_tanh(jnp.dot(h2.astype(bf16), w1_ref[...],
                           preferred_element_type=f32) + bf1_ref[...])
    f = jnp.dot(f.astype(bf16), w2_ref[...],
                preferred_element_type=f32) + bf2_ref[...]

    o_ref[...] = (x2 + f).astype(o_ref.dtype)


def _choose_block_rows(n_rows, seq_len):
    """Pick TN = independent rows per grid step (aim ~256 matmul rows/step)."""
    target = max(1, 256 // max(seq_len, 1))
    cands = [t for t in range(1, n_rows + 1)
             if n_rows % t == 0 and ((t * seq_len) % 8 == 0 or t == n_rows)]
    good = [t for t in cands if t <= target]
    return max(good) if good else min(cands)


def transformer_block_pallas(x, params, num_heads):
    """x: (B, S, D) exactly as the PyTorch forward receives it.

    params are in the PyTorch layout (see __main__).  Attention mixes axis 0
    (batch_first=False semantics of nn.MultiheadAttention).
    """
    g1, b1, wqkv, bqkv, wo, bo, g2, b2, w1, bf1, w2, bf2 = params
    L, N, D = x.shape            # L = attention axis (torch seq-first), N = independent axis
    H = num_heads
    Dh = D // H
    scale = 1.0 / math.sqrt(Dh)
    f32, bf16 = jnp.float32, jnp.bfloat16

    # ---- host-side weight prep (free layout plumbing) ----
    # split in_proj, pre-transpose every weight to (in, out), fold the q scale
    # into wq / bq, and cast matmul weights to bf16 for the MXU.
    wqkv = wqkv.astype(f32)
    bqkv_f = bqkv.reshape(-1).astype(f32)
    wq = (wqkv[:D] * scale).T.astype(bf16)
    wk = wqkv[D:2 * D].T.astype(bf16)
    wv = wqkv[2 * D:].T.astype(bf16)
    bq = (bqkv_f[:D] * scale).reshape(1, D)
    bk = bqkv_f[D:2 * D].reshape(1, D)
    bv = bqkv_f[2 * D:].reshape(1, D)

    prepped = [
        g1.reshape(1, D).astype(f32), b1.reshape(1, D).astype(f32),
        wq, wk, wv, bq, bk, bv,
        wo.astype(f32).T.astype(bf16), bo.reshape(1, D).astype(f32),
        g2.reshape(1, D).astype(f32), b2.reshape(1, D).astype(f32),
        w1.astype(f32).T.astype(bf16), bf1.reshape(1, -1).astype(f32),
        w2.astype(f32).T.astype(bf16), bf2.reshape(1, D).astype(f32),
    ]

    # ---- block layout: (L, N, D) -> (N, L, D) -> flat (N*L, D) so each grid
    # step sees / writes one sublane-dense (TN*L, D) slab. ----
    xt = jnp.transpose(x, (1, 0, 2)).reshape(N * L, D)
    TN = _choose_block_rows(N, L)
    M = TN * L

    kernel = functools.partial(_transformer_block_kernel, H, L)
    x_spec = pl.BlockSpec((M, D), lambda n: (n, 0))
    w_specs = [pl.BlockSpec(p.shape, lambda n: (0, 0)) for p in prepped]

    out = pl.pallas_call(
        kernel,
        out_shape=jax.ShapeDtypeStruct((N * L, D), x.dtype),
        grid_spec=pltpu.PrefetchScalarGridSpec(
            num_scalar_prefetch=0,
            grid=(N // TN,),
            in_specs=[x_spec] + w_specs,
            out_specs=x_spec,
            scratch_shapes=[pltpu.VMEM((M, D), bf16)],
        ),
        # For very large D, raise vmem_limit_bytes and/or tile the FF matmuls
        # over an extra "arbitrary" reduction axis; unnecessary at these sizes.
        compiler_params=pltpu.CompilerParams(dimension_semantics=("parallel",)),
    )(xt, *prepped)
    return jnp.transpose(out.reshape(N, L, D), (1, 0, 2))


def transformer_block_ref(x, params, num_heads):
    """Pure-JAX f32 reference with identical math (attention over axis 0)."""
    g1, b1, wqkv, bqkv, wo, bo, g2, b2, w1, bf1, w2, bf2 = params
    L, N, D = x.shape
    H = num_heads
    Dh = D // H
    x = x.astype(jnp.float32)

    h1 = _layernorm(x, g1.reshape(1, 1, -1), b1.reshape(1, 1, -1))
    qkv = jnp.einsum("lnd,ed->lne", h1, wqkv) + bqkv.reshape(1, 1, -1)
    q, k, v = jnp.split(qkv, 3, axis=-1)
    q = q.reshape(L, N, H, Dh) / math.sqrt(Dh)
    k = k.reshape(L, N, H, Dh)
    v = v.reshape(L, N, H, Dh)
    s = jnp.einsum("lnhd,mnhd->nhlm", q, k)
    p = jax.nn.softmax(s, axis=-1)
    o = jnp.einsum("nhlm,mnhd->lnhd", p, v).reshape(L, N, D)
    attn = jnp.einsum("lnd,ed->lne", o, wo) + bo.reshape(1, 1, -1)
    x2 = x + attn

    h2 = _layernorm(x2, g2.reshape(1, 1, -1), b2.reshape(1, 1, -1))
    f = _gelu_tanh(jnp.einsum("lnd,hd->lnh", h2, w1) + bf1.reshape(1, 1, -1))
    f = jnp.einsum("lnh,dh->lnd", f, w2) + bf2.reshape(1, 1, -1)
    return x2 + f


if __name__ == "__main__":
    cfg = dict(embedding_dimension=32, number_heads=4, drop_rate=0.0, bias=True)
    B, S = 8, 4                      # x is (batch, seq, d_model)
    D = cfg["embedding_dimension"]
    H = cfg["number_heads"]
    HFF = 4 * D

    key = jax.random.PRNGKey(0)
    ks = jax.random.split(key, 16)

    def nrm(k, shape, scale=0.05):
        return scale * jax.random.normal(k, shape, jnp.float32)

    params = [
        1.0 + nrm(ks[0], (1, D)),        # norm1 gamma
        nrm(ks[1], (1, D)),              # norm1 beta
        nrm(ks[2], (3 * D, D)),          # attention in_proj_weight
        nrm(ks[3], (1, 3 * D)),          # attention in_proj_bias
        nrm(ks[4], (D, D)),              # attention out_proj.weight
        nrm(ks[5], (1, D)),              # attention out_proj.bias
        1.0 + nrm(ks[6], (1, D)),        # norm2 gamma
        nrm(ks[7], (1, D)),              # norm2 beta
        nrm(ks[8], (HFF, D)),            # ff linear1 weight
        nrm(ks[9], (1, HFF)),            # ff linear1 bias
        nrm(ks[10], (D, HFF)),           # ff linear2 weight
        nrm(ks[11], (1, D)),             # ff linear2 bias
    ]

    x = jax.random.normal(ks[12], (B, S, D), jnp.float32)

    out = transformer_block_pallas(x, params, H)
    out = jax.block_until_ready(out)

    ref = jax.block_until_ready(transformer_block_ref(x, params, H))
    assert out.shape == x.shape and out.dtype == x.dtype
    np.testing.assert_allclose(np.asarray(out), np.asarray(ref), rtol=2e-2, atol=2e-2)

    print("KERNEL_OK")
</pallas_src>

<mosaic_0001>
module attributes {stable_mosaic.version = 11 : i64} {
  func.func @_transformer_block_kernel(%arg0: i32, %arg1: memref<32x32xf32, #tpu.memory_space<vmem>>, %arg2: memref<1x32xf32, #tpu.memory_space<vmem>>, %arg3: memref<1x32xf32, #tpu.memory_space<vmem>>, %arg4: memref<32x32xbf16, #tpu.memory_space<vmem>>, %arg5: memref<32x32xbf16, #tpu.memory_space<vmem>>, %arg6: memref<32x32xbf16, #tpu.memory_space<vmem>>, %arg7: memref<1x32xf32, #tpu.memory_space<vmem>>, %arg8: memref<1x32xf32, #tpu.memory_space<vmem>>, %arg9: memref<1x32xf32, #tpu.memory_space<vmem>>, %arg10: memref<32x32xbf16, #tpu.memory_space<vmem>>, %arg11: memref<1x32xf32, #tpu.memory_space<vmem>>, %arg12: memref<1x32xf32, #tpu.memory_space<vmem>>, %arg13: memref<1x32xf32, #tpu.memory_space<vmem>>, %arg14: memref<32x128xbf16, #tpu.memory_space<vmem>>, %arg15: memref<1x128xf32, #tpu.memory_space<vmem>>, %arg16: memref<128x32xbf16, #tpu.memory_space<vmem>>, %arg17: memref<1x32xf32, #tpu.memory_space<vmem>>, %arg18: memref<32x32xf32, #tpu.memory_space<vmem>>, %arg19: memref<32x32xbf16, #tpu.memory_space<vmem>>) attributes {dimension_semantics = [#tpu.dimension_semantics<parallel>], iteration_bounds = array<i64: 1>, scalar_prefetch = 0 : i64, scratch_operands = 1 : i64, tpu.core_type = #tpu.core_type<tc>, window_params = [{transform_indices = @transform_0, window_bounds = array<i64: 32, 32>}, {pipeline_mode = #tpu.pipeline_mode<synchronous>, transform_indices = @transform_1, window_bounds = array<i64: 1, 32>}, {pipeline_mode = #tpu.pipeline_mode<synchronous>, transform_indices = @transform_2, window_bounds = array<i64: 1, 32>}, {pipeline_mode = #tpu.pipeline_mode<synchronous>, transform_indices = @transform_3, window_bounds = array<i64: 32, 32>}, {pipeline_mode = #tpu.pipeline_mode<synchronous>, transform_indices = @transform_4, window_bounds = array<i64: 32, 32>}, {pipeline_mode = #tpu.pipeline_mode<synchronous>, transform_indices = @transform_5, window_bounds = array<i64: 32, 32>}, {pipeline_mode = #tpu.pipeline_mode<synchronous>, transform_indices = @transform_6, window_bounds = array<i64: 1, 32>}, {pipeline_mode = #tpu.pipeline_mode<synchronous>, transform_indices = @transform_7, window_bounds = array<i64: 1, 32>}, {pipeline_mode = #tpu.pipeline_mode<synchronous>, transform_indices = @transform_8, window_bounds = array<i64: 1, 32>}, {pipeline_mode = #tpu.pipeline_mode<synchronous>, transform_indices = @transform_9, window_bounds = array<i64: 32, 32>}, {pipeline_mode = #tpu.pipeline_mode<synchronous>, transform_indices = @transform_10, window_bounds = array<i64: 1, 32>}, {pipeline_mode = #tpu.pipeline_mode<synchronous>, transform_indices = @transform_11, window_bounds = array<i64: 1, 32>}, {pipeline_mode = #tpu.pipeline_mode<synchronous>, transform_indices = @transform_12, window_bounds = array<i64: 1, 32>}, {pipeline_mode = #tpu.pipeline_mode<synchronous>, transform_indices = @transform_13, window_bounds = array<i64: 32, 128>}, {pipeline_mode = #tpu.pipeline_mode<synchronous>, transform_indices = @transform_14, window_bounds = array<i64: 1, 128>}, {pipeline_mode = #tpu.pipeline_mode<synchronous>, transform_indices = @transform_15, window_bounds = array<i64: 128, 32>}, {pipeline_mode = #tpu.pipeline_mode<synchronous>, transform_indices = @transform_16, window_bounds = array<i64: 1, 32>}, {transform_indices = @transform_17, window_bounds = array<i64: 32, 32>}]} {
    %c0 = arith.constant 0 : index
    %c0_0 = arith.constant 0 : index
    %0 = vector.load %arg1[%c0, %c0_0] : memref<32x32xf32, #tpu.memory_space<vmem>>, vector<32x32xf32>
    %c0_1 = arith.constant 0 : index
    %c0_2 = arith.constant 0 : index
    %1 = vector.load %arg2[%c0_1, %c0_2] : memref<1x32xf32, #tpu.memory_space<vmem>>, vector<1x32xf32>
    %c0_3 = arith.constant 0 : index
    %c0_4 = arith.constant 0 : index
    %2 = vector.load %arg3[%c0_3, %c0_4] : memref<1x32xf32, #tpu.memory_space<vmem>>, vector<1x32xf32>
    %cst = arith.constant dense<0.000000e+00> : vector<32xf32>
    %3 = vector.multi_reduction <add>, %0, %cst [1] : vector<32x32xf32> to vector<32xf32>
    %4 = vector.shape_cast %3 : vector<32xf32> to vector<32x1xf32>
    %cst_5 = arith.constant 3.200000e+01 : f32
    %5 = vector.broadcast %cst_5 : f32 to vector<32x1xf32>
    %6 = arith.divf %4, %5 : vector<32x1xf32>
    %7 = vector.broadcast %6 : vector<32x1xf32> to vector<32x32xf32>
    %8 = arith.subf %0, %7 : vector<32x32xf32>
    %9 = arith.mulf %8, %8 : vector<32x32xf32>
    %cst_6 = arith.constant dense<0.000000e+00> : vector<32xf32>
    %10 = vector.multi_reduction <add>, %9, %cst_6 [1] : vector<32x32xf32> to vector<32xf32>
    %11 = vector.shape_cast %10 : vector<32xf32> to vector<32x1xf32>
    %cst_7 = arith.constant 3.200000e+01 : f32
    %12 = vector.broadcast %cst_7 : f32 to vector<32x1xf32>
    %13 = arith.divf %11, %12 : vector<32x1xf32>
    %14 = vector.broadcast %6 : vector<32x1xf32> to vector<32x32xf32>
    %15 = arith.subf %0, %14 : vector<32x32xf32>
    %cst_8 = arith.constant 9.99999974E-6 : f32
    %16 = vector.broadcast %cst_8 : f32 to vector<32x1xf32>
    %17 = arith.addf %13, %16 : vector<32x1xf32>
    %18 = math.rsqrt %17 : vector<32x1xf32>
    %19 = vector.broadcast %18 : vector<32x1xf32> to vector<32x32xf32>
    %20 = arith.mulf %15, %19 : vector<32x32xf32>
    %21 = vector.broadcast %1 : vector<1x32xf32> to vector<32x32xf32>
    %22 = arith.mulf %20, %21 : vector<32x32xf32>
    %23 = vector.broadcast %2 : vector<1x32xf32> to vector<32x32xf32>
    %24 = arith.addf %22, %23 : vector<32x32xf32>
    %25 = arith.truncf %24 : vector<32x32xf32> to vector<32x32xbf16>
    %c0_9 = arith.constant 0 : index
    %c0_10 = arith.constant 0 : index
    %26 = vector.load %arg4[%c0_9, %c0_10] : memref<32x32xbf16, #tpu.memory_space<vmem>>, vector<32x32xbf16>
    %cst_11 = arith.constant dense<0.000000e+00> : vector<32x32xf32>
    %27 = tpu.matmul %25, %26, %cst_11 {dimension_numbers = #tpu.dot_dimension_numbers<[1], [0], [0], [1], [0, 0, 1, 1], [], []>} : vector<32x32xbf16>, vector<32x32xbf16>, vector<32x32xf32> -> vector<32x32xf32>
    %c0_12 = arith.constant 0 : index
    %c0_13 = arith.constant 0 : index
    %28 = vector.load %arg7[%c0_12, %c0_13] : memref<1x32xf32, #tpu.memory_space<vmem>>, vector<1x32xf32>
    %29 = vector.broadcast %28 : vector<1x32xf32> to vector<32x32xf32>
    %30 = arith.addf %27, %29 : vector<32x32xf32>
    %c0_14 = arith.constant 0 : index
    %c0_15 = arith.constant 0 : index
    %31 = vector.load %arg5[%c0_14, %c0_15] : memref<32x32xbf16, #tpu.memory_space<vmem>>, vector<32x32xbf16>
    %cst_16 = arith.constant dense<0.000000e+00> : vector<32x32xf32>
    %32 = tpu.matmul %25, %31, %cst_16 {dimension_numbers = #tpu.dot_dimension_numbers<[1], [0], [0], [1], [0, 0, 1, 1], [], []>} : vector<32x32xbf16>, vector<32x32xbf16>, vector<32x32xf32> -> vector<32x32xf32>
    %c0_17 = arith.constant 0 : index
    %c0_18 = arith.constant 0 : index
    %33 = vector.load %arg8[%c0_17, %c0_18] : memref<1x32xf32, #tpu.memory_space<vmem>>, vector<1x32xf32>
    %34 = vector.broadcast %33 : vector<1x32xf32> to vector<32x32xf32>
    %35 = arith.addf %32, %34 : vector<32x32xf32>
    %c0_19 = arith.constant 0 : index
    %c0_20 = arith.constant 0 : index
    %36 = vector.load %arg6[%c0_19, %c0_20] : memref<32x32xbf16, #tpu.memory_space<vmem>>, vector<32x32xbf16>
    %cst_21 = arith.constant dense<0.000000e+00> : vector<32x32xf32>
    %37 = tpu.matmul %25, %36, %cst_21 {dimension_numbers = #tpu.dot_dimension_numbers<[1], [0], [0], [1], [0, 0, 1, 1], [], []>} : vector<32x32xbf16>, vector<32x32xbf16>, vector<32x32xf32> -> vector<32x32xf32>
    %c0_22 = arith.constant 0 : index
    %c0_23 = arith.constant 0 : index
    %38 = vector.load %arg9[%c0_22, %c0_23] : memref<1x32xf32, #tpu.memory_space<vmem>>, vector<1x32xf32>
    %39 = vector.broadcast %38 : vector<1x32xf32> to vector<32x32xf32>
    %40 = arith.addf %37, %39 : vector<32x32xf32>
    %41 = vector.extract_strided_slice %30 {offsets = [0, 0], sizes = [32, 8], strides = [1, 1]} : vector<32x32xf32> to vector<32x8xf32>
    %42 = vector.shape_cast %41 : vector<32x8xf32> to vector<4x8x8xf32>
    %43 = arith.truncf %42 : vector<4x8x8xf32> to vector<4x8x8xbf16>
    %44 = vector.extract_strided_slice %35 {offsets = [0, 0], sizes = [32, 8], strides = [1, 1]} : vector<32x32xf32> to vector<32x8xf32>
    %45 = vector.shape_cast %44 : vector<32x8xf32> to vector<4x8x8xf32>
    %46 = arith.truncf %45 : vector<4x8x8xf32> to vector<4x8x8xbf16>
    %47 = vector.extract_strided_slice %40 {offsets = [0, 0], sizes = [32, 8], strides = [1, 1]} : vector<32x32xf32> to vector<32x8xf32>
    %48 = vector.shape_cast %47 : vector<32x8xf32> to vector<4x8x8xf32>
    %49 = arith.truncf %48 : vector<4x8x8xf32> to vector<4x8x8xbf16>
    %cst_24 = arith.constant dense<0.000000e+00> : vector<4x8x8xf32>
    %50 = tpu.matmul %43, %46, %cst_24 {dimension_numbers = #tpu.dot_dimension_numbers<[2], [2], [1], [1], [0, 0, 0, 1, 1, 1], [0], [0]>} : vector<4x8x8xbf16>, vector<4x8x8xbf16>, vector<4x8x8xf32> -> vector<4x8x8xf32>
    %cst_25 = arith.constant dense<0xFF800000> : vector<4x8xf32>
    %51 = vector.multi_reduction <maximumf>, %50, %cst_25 [2] : vector<4x8x8xf32> to vector<4x8xf32>
    %52 = vector.shape_cast %51 : vector<4x8xf32> to vector<4x8x1xf32>
    %53 = vector.broadcast %52 : vector<4x8x1xf32> to vector<4x8x8xf32>
    %54 = arith.subf %50, %53 : vector<4x8x8xf32>
    %55 = math.exp %54 : vector<4x8x8xf32>
    %cst_26 = arith.constant dense<0.000000e+00> : vector<4x8xf32>
    %56 = vector.multi_reduction <add>, %55, %cst_26 [2] : vector<4x8x8xf32> to vector<4x8xf32>
    %57 = vector.shape_cast %56 : vector<4x8xf32> to vector<4x8x1xf32>
    %58 = tpu.reciprocal %57 {approx = true} : vector<4x8x1xf32> -> vector<4x8x1xf32>
    %59 = vector.broadcast %58 : vector<4x8x1xf32> to vector<4x8x8xf32>
    %60 = arith.mulf %55, %59 : vector<4x8x8xf32>
    %61 = arith.truncf %60 : vector<4x8x8xf32> to vector<4x8x8xbf16>
    %cst_27 = arith.constant dense<0.000000e+00> : vector<4x8x8xf32>
    %62 = tpu.matmul %61, %49, %cst_27 {dimension_numbers = #tpu.dot_dimension_numbers<[2], [1], [1], [2], [0, 0, 0, 1, 1, 2], [0], [0]>} : vector<4x8x8xbf16>, vector<4x8x8xbf16>, vector<4x8x8xf32> -> vector<4x8x8xf32>
    %63 = vector.shape_cast %62 : vector<4x8x8xf32> to vector<32x8xf32>
    %64 = arith.truncf %63 : vector<32x8xf32> to vector<32x8xbf16>
    %c0_28 = arith.constant 0 : index
    %c0_29 = arith.constant 0 : index
    %65 = vector.load %arg19[%c0_28, %c0_29] : memref<32x32xbf16, #tpu.memory_space<vmem>>, vector<32x8xbf16>
    tpu.vector_store %arg19[%c0_28, %c0_29], %64 {strides = array<i32>} : memref<32x32xbf16, #tpu.memory_space<vmem>>, vector<32x8xbf16>,
    %66 = vector.extract_strided_slice %30 {offsets = [0, 8], sizes = [32, 8], strides = [1, 1]} : vector<32x32xf32> to vector<32x8xf32>
    %67 = vector.shape_cast %66 : vector<32x8xf32> to vector<4x8x8xf32>
    %68 = arith.truncf %67 : vector<4x8x8xf32> to vector<4x8x8xbf16>
    %69 = vector.extract_strided_slice %35 {offsets = [0, 8], sizes = [32, 8], strides = [1, 1]} : vector<32x32xf32> to vector<32x8xf32>
    %70 = vector.shape_cast %69 : vector<32x8xf32> to vector<4x8x8xf32>
    %71 = arith.truncf %70 : vector<4x8x8xf32> to vector<4x8x8xbf16>
    %72 = vector.extract_strided_slice %40 {offsets = [0, 8], sizes = [32, 8], strides = [1, 1]} : vector<32x32xf32> to vector<32x8xf32>
    %73 = vector.shape_cast %72 : vector<32x8xf32> to vector<4x8x8xf32>
    %74 = arith.truncf %73 : vector<4x8x8xf32> to vector<4x8x8xbf16>
    %cst_30 = arith.constant dense<0.000000e+00> : vector<4x8x8xf32>
    %75 = tpu.matmul %68, %71, %cst_30 {dimension_numbers = #tpu.dot_dimension_numbers<[2], [2], [1], [1], [0, 0, 0, 1, 1, 1], [0], [0]>} : vector<4x8x8xbf16>, vector<4x8x8xbf16>, vector<4x8x8xf32> -> vector<4x8x8xf32>
    %cst_31 = arith.constant dense<0xFF800000> : vector<4x8xf32>
    %76 = vector.multi_reduction <maximumf>, %75, %cst_31 [2] : vector<4x8x8xf32> to vector<4x8xf32>
    %77 = vector.shape_cast %76 : vector<4x8xf32> to vector<4x8x1xf32>
    %78 = vector.broadcast %77 : vector<4x8x1xf32> to vector<4x8x8xf32>
    %79 = arith.subf %75, %78 : vector<4x8x8xf32>
    %80 = math.exp %79 : vector<4x8x8xf32>
    %cst_32 = arith.constant dense<0.000000e+00> : vector<4x8xf32>
    %81 = vector.multi_reduction <add>, %80, %cst_32 [2] : vector<4x8x8xf32> to vector<4x8xf32>
    %82 = vector.shape_cast %81 : vector<4x8xf32> to vector<4x8x1xf32>
    %83 = tpu.reciprocal %82 {approx = true} : vector<4x8x1xf32> -> vector<4x8x1xf32>
    %84 = vector.broadcast %83 : vector<4x8x1xf32> to vector<4x8x8xf32>
    %85 = arith.mulf %80, %84 : vector<4x8x8xf32>
    %86 = arith.truncf %85 : vector<4x8x8xf32> to vector<4x8x8xbf16>
    %cst_33 = arith.constant dense<0.000000e+00> : vector<4x8x8xf32>
    %87 = tpu.matmul %86, %74, %cst_33 {dimension_numbers = #tpu.dot_dimension_numbers<[2], [1], [1], [2], [0, 0, 0, 1, 1, 2], [0], [0]>} : vector<4x8x8xbf16>, vector<4x8x8xbf16>, vector<4x8x8xf32> -> vector<4x8x8xf32>
    %88 = vector.shape_cast %87 : vector<4x8x8xf32> to vector<32x8xf32>
    %89 = arith.truncf %88 : vector<32x8xf32> to vector<32x8xbf16>
    %c0_34 = arith.constant 0 : index
    %c8 = arith.constant 8 : index
    %90 = vector.load %arg19[%c0_34, %c8] : memref<32x32xbf16, #tpu.memory_space<vmem>>, vector<32x8xbf16>
    tpu.vector_store %arg19[%c0_34, %c8], %89 {strides = array<i32>} : memref<32x32xbf16, #tpu.memory_space<vmem>>, vector<32x8xbf16>,
    %91 = vector.extract_strided_slice %30 {offsets = [0, 16], sizes = [32, 8], strides = [1, 1]} : vector<32x32xf32> to vector<32x8xf32>
    %92 = vector.shape_cast %91 : vector<32x8xf32> to vector<4x8x8xf32>
    %93 = arith.truncf %92 : vector<4x8x8xf32> to vector<4x8x8xbf16>
    %94 = vector.extract_strided_slice %35 {offsets = [0, 16], sizes = [32, 8], strides = [1, 1]} : vector<32x32xf32> to vector<32x8xf32>
    %95 = vector.shape_cast %94 : vector<32x8xf32> to vector<4x8x8xf32>
    %96 = arith.truncf %95 : vector<4x8x8xf32> to vector<4x8x8xbf16>
    %97 = vector.extract_strided_slice %40 {offsets = [0, 16], sizes = [32, 8], strides = [1, 1]} : vector<32x32xf32> to vector<32x8xf32>
    %98 = vector.shape_cast %97 : vector<32x8xf32> to vector<4x8x8xf32>
    %99 = arith.truncf %98 : vector<4x8x8xf32> to vector<4x8x8xbf16>
    %cst_35 = arith.constant dense<0.000000e+00> : vector<4x8x8xf32>
    %100 = tpu.matmul %93, %96, %cst_35 {dimension_numbers = #tpu.dot_dimension_numbers<[2], [2], [1], [1], [0, 0, 0, 1, 1, 1], [0], [0]>} : vector<4x8x8xbf16>, vector<4x8x8xbf16>, vector<4x8x8xf32> -> vector<4x8x8xf32>
    %cst_36 = arith.constant dense<0xFF800000> : vector<4x8xf32>
    %101 = vector.multi_reduction <maximumf>, %100, %cst_36 [2] : vector<4x8x8xf32> to vector<4x8xf32>
    %102 = vector.shape_cast %101 : vector<4x8xf32> to vector<4x8x1xf32>
    %103 = vector.broadcast %102 : vector<4x8x1xf32> to vector<4x8x8xf32>
    %104 = arith.subf %100, %103 : vector<4x8x8xf32>
    %105 = math.exp %104 : vector<4x8x8xf32>
    %cst_37 = arith.constant dense<0.000000e+00> : vector<4x8xf32>
    %106 = vector.multi_reduction <add>, %105, %cst_37 [2] : vector<4x8x8xf32> to vector<4x8xf32>
    %107 = vector.shape_cast %106 : vector<4x8xf32> to vector<4x8x1xf32>
    %108 = tpu.reciprocal %107 {approx = true} : vector<4x8x1xf32> -> vector<4x8x1xf32>
    %109 = vector.broadcast %108 : vector<4x8x1xf32> to vector<4x8x8xf32>
    %110 = arith.mulf %105, %109 : vector<4x8x8xf32>
    %111 = arith.truncf %110 : vector<4x8x8xf32> to vector<4x8x8xbf16>
    %cst_38 = arith.constant dense<0.000000e+00> : vector<4x8x8xf32>
    %112 = tpu.matmul %111, %99, %cst_38 {dimension_numbers = #tpu.dot_dimension_numbers<[2], [1], [1], [2], [0, 0, 0, 1, 1, 2], [0], [0]>} : vector<4x8x8xbf16>, vector<4x8x8xbf16>, vector<4x8x8xf32> -> vector<4x8x8xf32>
    %113 = vector.shape_cast %112 : vector<4x8x8xf32> to vector<32x8xf32>
    %114 = arith.truncf %113 : vector<32x8xf32> to vector<32x8xbf16>
    %c0_39 = arith.constant 0 : index
    %c16 = arith.constant 16 : index
    %115 = vector.load %arg19[%c0_39, %c16] : memref<32x32xbf16, #tpu.memory_space<vmem>>, vector<32x8xbf16>
    tpu.vector_store %arg19[%c0_39, %c16], %114 {strides = array<i32>} : memref<32x32xbf16, #tpu.memory_space<vmem>>, vector<32x8xbf16>,
    %116 = vector.extract_strided_slice %30 {offsets = [0, 24], sizes = [32, 8], strides = [1, 1]} : vector<32x32xf32> to vector<32x8xf32>
    %117 = vector.shape_cast %116 : vector<32x8xf32> to vector<4x8x8xf32>
    %118 = arith.truncf %117 : vector<4x8x8xf32> to vector<4x8x8xbf16>
    %119 = vector.extract_strided_slice %35 {offsets = [0, 24], sizes = [32, 8], strides = [1, 1]} : vector<32x32xf32> to vector<32x8xf32>
    %120 = vector.shape_cast %119 : vector<32x8xf32> to vector<4x8x8xf32>
    %121 = arith.truncf %120 : vector<4x8x8xf32> to vector<4x8x8xbf16>
    %122 = vector.extract_strided_slice %40 {offsets = [0, 24], sizes = [32, 8], strides = [1, 1]} : vector<32x32xf32> to vector<32x8xf32>
    %123 = vector.shape_cast %122 : vector<32x8xf32> to vector<4x8x8xf32>
    %124 = arith.truncf %123 : vector<4x8x8xf32> to vector<4x8x8xbf16>
    %cst_40 = arith.constant dense<0.000000e+00> : vector<4x8x8xf32>
    %125 = tpu.matmul %118, %121, %cst_40 {dimension_numbers = #tpu.dot_dimension_numbers<[2], [2], [1], [1], [0, 0, 0, 1, 1, 1], [0], [0]>} : vector<4x8x8xbf16>, vector<4x8x8xbf16>, vector<4x8x8xf32> -> vector<4x8x8xf32>
    %cst_41 = arith.constant dense<0xFF800000> : vector<4x8xf32>
    %126 = vector.multi_reduction <maximumf>, %125, %cst_41 [2] : vector<4x8x8xf32> to vector<4x8xf32>
    %127 = vector.shape_cast %126 : vector<4x8xf32> to vector<4x8x1xf32>
    %128 = vector.broadcast %127 : vector<4x8x1xf32> to vector<4x8x8xf32>
    %129 = arith.subf %125, %128 : vector<4x8x8xf32>
    %130 = math.exp %129 : vector<4x8x8xf32>
    %cst_42 = arith.constant dense<0.000000e+00> : vector<4x8xf32>
    %131 = vector.multi_reduction <add>, %130, %cst_42 [2] : vector<4x8x8xf32> to vector<4x8xf32>
    %132 = vector.shape_cast %131 : vector<4x8xf32> to vector<4x8x1xf32>
    %133 = tpu.reciprocal %132 {approx = true} : vector<4x8x1xf32> -> vector<4x8x1xf32>
    %134 = vector.broadcast %133 : vector<4x8x1xf32> to vector<4x8x8xf32>
    %135 = arith.mulf %130, %134 : vector<4x8x8xf32>
    %136 = arith.truncf %135 : vector<4x8x8xf32> to vector<4x8x8xbf16>
    %cst_43 = arith.constant dense<0.000000e+00> : vector<4x8x8xf32>
    %137 = tpu.matmul %136, %124, %cst_43 {dimension_numbers = #tpu.dot_dimension_numbers<[2], [1], [1], [2], [0, 0, 0, 1, 1, 2], [0], [0]>} : vector<4x8x8xbf16>, vector<4x8x8xbf16>, vector<4x8x8xf32> -> vector<4x8x8xf32>
    %138 = vector.shape_cast %137 : vector<4x8x8xf32> to vector<32x8xf32>
    %139 = arith.truncf %138 : vector<32x8xf32> to vector<32x8xbf16>
    %c0_44 = arith.constant 0 : index
    %c24 = arith.constant 24 : index
    %140 = vector.load %arg19[%c0_44, %c24] : memref<32x32xbf16, #tpu.memory_space<vmem>>, vector<32x8xbf16>
    tpu.vector_store %arg19[%c0_44, %c24], %139 {strides = array<i32>} : memref<32x32xbf16, #tpu.memory_space<vmem>>, vector<32x8xbf16>,
    %c0_45 = arith.constant 0 : index
    %c0_46 = arith.constant 0 : index
    %141 = vector.load %arg19[%c0_45, %c0_46] : memref<32x32xbf16, #tpu.memory_space<vmem>>, vector<32x32xbf16>
    %c0_47 = arith.constant 0 : index
    %c0_48 = arith.constant 0 : index
    %142 = vector.load %arg10[%c0_47, %c0_48] : memref<32x32xbf16, #tpu.memory_space<vmem>>, vector<32x32xbf16>
    %cst_49 = arith.constant dense<0.000000e+00> : vector<32x32xf32>
    %143 = tpu.matmul %141, %142, %cst_49 {dimension_numbers = #tpu.dot_dimension_numbers<[1], [0], [0], [1], [0, 0, 1, 1], [], []>} : vector<32x32xbf16>, vector<32x32xbf16>, vector<32x32xf32> -> vector<32x32xf32>
    %c0_50 = arith.constant 0 : index
    %c0_51 = arith.constant 0 : index
    %144 = vector.load %arg11[%c0_50, %c0_51] : memref<1x32xf32, #tpu.memory_space<vmem>>, vector<1x32xf32>
    %145 = vector.broadcast %144 : vector<1x32xf32> to vector<32x32xf32>
    %146 = arith.addf %143, %145 : vector<32x32xf32>
    %147 = arith.addf %0, %146 : vector<32x32xf32>
    %c0_52 = arith.constant 0 : index
    %c0_53 = arith.constant 0 : index
    %148 = vector.load %arg12[%c0_52, %c0_53] : memref<1x32xf32, #tpu.memory_space<vmem>>, vector<1x32xf32>
    %c0_54 = arith.constant 0 : index
    %c0_55 = arith.constant 0 : index
    %149 = vector.load %arg13[%c0_54, %c0_55] : memref<1x32xf32, #tpu.memory_space<vmem>>, vector<1x32xf32>
    %cst_56 = arith.constant dense<0.000000e+00> : vector<32xf32>
    %150 = vector.multi_reduction <add>, %147, %cst_56 [1] : vector<32x32xf32> to vector<32xf32>
    %151 = vector.shape_cast %150 : vector<32xf32> to vector<32x1xf32>
    %cst_57 = arith.constant 3.200000e+01 : f32
    %152 = vector.broadcast %cst_57 : f32 to vector<32x1xf32>
    %153 = arith.divf %151, %152 : vector<32x1xf32>
    %154 = vector.broadcast %153 : vector<32x1xf32> to vector<32x32xf32>
    %155 = arith.subf %147, %154 : vector<32x32xf32>
    %156 = arith.mulf %155, %155 : vector<32x32xf32>
    %cst_58 = arith.constant dense<0.000000e+00> : vector<32xf32>
    %157 = vector.multi_reduction <add>, %156, %cst_58 [1] : vector<32x32xf32> to vector<32xf32>
    %158 = vector.shape_cast %157 : vector<32xf32> to vector<32x1xf32>
    %cst_59 = arith.constant 3.200000e+01 : f32
    %159 = vector.broadcast %cst_59 : f32 to vector<32x1xf32>
    %160 = arith.divf %158, %159 : vector<32x1xf32>
    %161 = vector.broadcast %153 : vector<32x1xf32> to vector<32x32xf32>
    %162 = arith.subf %147, %161 : vector<32x32xf32>
    %cst_60 = arith.constant 9.99999974E-6 : f32
    %163 = vector.broadcast %cst_60 : f32 to vector<32x1xf32>
    %164 = arith.addf %160, %163 : vector<32x1xf32>
    %165 = math.rsqrt %164 : vector<32x1xf32>
    %166 = vector.broadcast %165 : vector<32x1xf32> to vector<32x32xf32>
    %167 = arith.mulf %162, %166 : vector<32x32xf32>
    %168 = vector.broadcast %148 : vector<1x32xf32> to vector<32x32xf32>
    %169 = arith.mulf %167, %168 : vector<32x32xf32>
    %170 = vector.broadcast %149 : vector<1x32xf32> to vector<32x32xf32>
    %171 = arith.addf %169, %170 : vector<32x32xf32>
    %172 = arith.truncf %171 : vector<32x32xf32> to vector<32x32xbf16>
    %c0_61 = arith.constant 0 : index
    %c0_62 = arith.constant 0 : index
    %173 = vector.load %arg14[%c0_61, %c0_62] : memref<32x128xbf16, #tpu.memory_space<vmem>>, vector<32x128xbf16>
    %cst_63 = arith.constant dense<0.000000e+00> : vector<32x128xf32>
    %174 = tpu.matmul %172, %173, %cst_63 {dimension_numbers = #tpu.dot_dimension_numbers<[1], [0], [0], [1], [0, 0, 1, 1], [], []>} : vector<32x32xbf16>, vector<32x128xbf16>, vector<32x128xf32> -> vector<32x128xf32>
    %c0_64 = arith.constant 0 : index
    %c0_65 = arith.constant 0 : index
    %175 = vector.load %arg15[%c0_64, %c0_65] : memref<1x128xf32, #tpu.memory_space<vmem>>, vector<1x128xf32>
    %176 = vector.broadcast %175 : vector<1x128xf32> to vector<32x128xf32>
    %177 = arith.addf %174, %176 : vector<32x128xf32>
    %cst_66 = arith.constant 5.000000e-01 : f32
    %178 = vector.broadcast %cst_66 : f32 to vector<32x128xf32>
    %179 = arith.mulf %178, %177 : vector<32x128xf32>
    %cst_67 = arith.constant 0.636619746 : f32
    %180 = math.sqrt %cst_67 : f32
    %cst_68 = arith.constant 4.471500e-02 : f32
    %181 = vector.broadcast %cst_68 : f32 to vector<32x128xf32>
    %182 = arith.mulf %181, %177 : vector<32x128xf32>
    %183 = arith.mulf %182, %177 : vector<32x128xf32>
    %184 = arith.mulf %183, %177 : vector<32x128xf32>
    %185 = arith.addf %177, %184 : vector<32x128xf32>
    %186 = vector.broadcast %180 : f32 to vector<32x128xf32>
    %187 = arith.mulf %186, %185 : vector<32x128xf32>
    %188 = math.tanh %187 : vector<32x128xf32>
    %cst_69 = arith.constant 1.000000e+00 : f32
    %189 = vector.broadcast %cst_69 : f32 to vector<32x128xf32>
    %190 = arith.addf %189, %188 : vector<32x128xf32>
    %191 = arith.mulf %179, %190 : vector<32x128xf32>
    %192 = arith.truncf %191 : vector<32x128xf32> to vector<32x128xbf16>
    %c0_70 = arith.constant 0 : index
    %c0_71 = arith.constant 0 : index
    %193 = vector.load %arg16[%c0_70, %c0_71] : memref<128x32xbf16, #tpu.memory_space<vmem>>, vector<128x32xbf16>
    %cst_72 = arith.constant dense<0.000000e+00> : vector<32x32xf32>
    %194 = tpu.matmul %192, %193, %cst_72 {dimension_numbers = #tpu.dot_dimension_numbers<[1], [0], [0], [1], [0, 0, 1, 1], [], []>} : vector<32x128xbf16>, vector<128x32xbf16>, vector<32x32xf32> -> vector<32x32xf32>
    %c0_73 = arith.constant 0 : index
    %c0_74 = arith.constant 0 : index
    %195 = vector.load %arg17[%c0_73, %c0_74] : memref<1x32xf32, #tpu.memory_space<vmem>>, vector<1x32xf32>
    %196 = vector.broadcast %195 : vector<1x32xf32> to vector<32x32xf32>
    %197 = arith.addf %194, %196 : vector<32x32xf32>
    %198 = arith.addf %147, %197 : vector<32x32xf32>
    %c0_75 = arith.constant 0 : index
    %c0_76 = arith.constant 0 : index
    %199 = vector.load %arg18[%c0_75, %c0_76] : memref<32x32xf32, #tpu.memory_space<vmem>>, vector<32x32xf32>
    tpu.vector_store %arg18[%c0_75, %c0_76], %198 {strides = array<i32>} : memref<32x32xf32, #tpu.memory_space<vmem>>, vector<32x32xf32>,
    return
  }
  func.func @transform_0(%arg0: i32) -> (i32, i32) {
    %c0_i32 = arith.constant 0 : i32
    %c0_i32_0 = arith.constant 0 : i32
    return %arg0, %c0_i32 : i32, i32
  }
  func.func @transform_1(%arg0: i32) -> (i32, i32) {
    %c0_i32 = arith.constant 0 : i32
    %c0_i32_0 = arith.constant 0 : i32
    %c0_i32_1 = arith.constant 0 : i32
    return %c0_i32, %c0_i32_0 : i32, i32
  }
  func.func @transform_2(%arg0: i32) -> (i32, i32) {
    %c0_i32 = arith.constant 0 : i32
    %c0_i32_0 = arith.constant 0 : i32
    %c0_i32_1 = arith.constant 0 : i32
    return %c0_i32, %c0_i32_0 : i32, i32
  }
  func.func @transform_3(%arg0: i32) -> (i32, i32) {
    %c0_i32 = arith.constant 0 : i32
    %c0_i32_0 = arith.constant 0 : i32
    %c0_i32_1 = arith.constant 0 : i32
    return %c0_i32, %c0_i32_0 : i32, i32
  }
  func.func @transform_4(%arg0: i32) -> (i32, i32) {
    %c0_i32 = arith.constant 0 : i32
    %c0_i32_0 = arith.constant 0 : i32
    %c0_i32_1 = arith.constant 0 : i32
    return %c0_i32, %c0_i32_0 : i32, i32
  }
  func.func @transform_5(%arg0: i32) -> (i32, i32) {
    %c0_i32 = arith.constant 0 : i32
    %c0_i32_0 = arith.constant 0 : i32
    %c0_i32_1 = arith.constant 0 : i32
    return %c0_i32, %c0_i32_0 : i32, i32
  }
  func.func @transform_6(%arg0: i32) -> (i32, i32) {
    %c0_i32 = arith.constant 0 : i32
    %c0_i32_0 = arith.constant 0 : i32
    %c0_i32_1 = arith.constant 0 : i32
    return %c0_i32, %c0_i32_0 : i32, i32
  }
  func.func @transform_7(%arg0: i32) -> (i32, i32) {
    %c0_i32 = arith.constant 0 : i32
    %c0_i32_0 = arith.constant 0 : i32
    %c0_i32_1 = arith.constant 0 : i32
    return %c0_i32, %c0_i32_0 : i32, i32
  }
  func.func @transform_8(%arg0: i32) -> (i32, i32) {
    %c0_i32 = arith.constant 0 : i32
    %c0_i32_0 = arith.constant 0 : i32
    %c0_i32_1 = arith.constant 0 : i32
    return %c0_i32, %c0_i32_0 : i32, i32
  }
  func.func @transform_9(%arg0: i32) -> (i32, i32) {
    %c0_i32 = arith.constant 0 : i32
    %c0_i32_0 = arith.constant 0 : i32
    %c0_i32_1 = arith.constant 0 : i32
    return %c0_i32, %c0_i32_0 : i32, i32
  }
  func.func @transform_10(%arg0: i32) -> (i32, i32) {
    %c0_i32 = arith.constant 0 : i32
    %c0_i32_0 = arith.constant 0 : i32
    %c0_i32_1 = arith.constant 0 : i32
    return %c0_i32, %c0_i32_0 : i32, i32
  }
  func.func @transform_11(%arg0: i32) -> (i32, i32) {
    %c0_i32 = arith.constant 0 : i32
    %c0_i32_0 = arith.constant 0 : i32
    %c0_i32_1 = arith.constant 0 : i32
    return %c0_i32, %c0_i32_0 : i32, i32
  }
  func.func @transform_12(%arg0: i32) -> (i32, i32) {
    %c0_i32 = arith.constant 0 : i32
    %c0_i32_0 = arith.constant 0 : i32
    %c0_i32_1 = arith.constant 0 : i32
    return %c0_i32, %c0_i32_0 : i32, i32
  }
  func.func @transform_13(%arg0: i32) -> (i32, i32) {
    %c0_i32 = arith.constant 0 : i32
    %c0_i32_0 = arith.constant 0 : i32
    %c0_i32_1 = arith.constant 0 : i32
    return %c0_i32, %c0_i32_0 : i32, i32
  }
  func.func @transform_14(%arg0: i32) -> (i32, i32) {
    %c0_i32 = arith.constant 0 : i32
    %c0_i32_0 = arith.constant 0 : i32
    %c0_i32_1 = arith.constant 0 : i32
    return %c0_i32, %c0_i32_0 : i32, i32
  }
  func.func @transform_15(%arg0: i32) -> (i32, i32) {
    %c0_i32 = arith.constant 0 : i32
    %c0_i32_0 = arith.constant 0 : i32
    %c0_i32_1 = arith.constant 0 : i32
    return %c0_i32, %c0_i32_0 : i32, i32
  }
  func.func @transform_16(%arg0: i32) -> (i32, i32) {
    %c0_i32 = arith.constant 0 : i32
    %c0_i32_0 = arith.constant 0 : i32
    %c0_i32_1 = arith.constant 0 : i32
    return %c0_i32, %c0_i32_0 : i32, i32
  }
  func.func @transform_17(%arg0: i32) -> (i32, i32) {
    %c0_i32 = arith.constant 0 : i32
    %c0_i32_0 = arith.constant 0 : i32
    return %arg0, %c0_i32 : i32, i32
  }
}

</mosaic_0001>

<bundles_post_ra>
// kernel: tpu_custom_call.1
= control target key start
LH: loop header
LB: loop body
LE: loop exit
PB: predicated region body
PF: predicated region fallthrough
CT: control target
= control target key end

     0   :  { %s4082_s0 = inlined_call_operand.vmem [shape: f32[32,32], index: 0, kind: input, shape index: {}]   ;;  %s4083_s1 = inlined_call_operand.vmem [shape: f32[1,32], index: 1, kind: input, shape index: {}]   ;;  %s4084_s2 = inlined_call_operand.hbm [shape: f32[1,32], index: 2, kind: input, shape index: {}]   ;;  %s4085_s3 = inlined_call_operand.vmem [shape: bf16[32,32], index: 3, kind: input, shape index: {}]   ;;  %s4086_s4 = inlined_call_operand.vmem [shape: bf16[32,32], index: 4, kind: input, shape index: {}]   ;;  %s4087_s5 = inlined_call_operand.vmem [shape: bf16[32,32], index: 5, kind: input, shape index: {}]   ;;  %s4088_s6 = inlined_call_operand.hbm [shape: f32[1,32], index: 6, kind: input, shape index: {}]   ;;  %s4089_s7 = inlined_call_operand.hbm [shape: f32[1,32], index: 7, kind: input, shape index: {}]   ;;  %s4090_s8 = inlined_call_operand.hbm [shape: f32[1,32], index: 8, kind: input, shape index: {}]   ;;  %s4091_s9 = inlined_call_operand.vmem [shape: bf16[32,32], index: 9, kind: input, shape index: {}]   ;;  %s4092_s10 = inlined_call_operand.hbm [shape: f32[1,32], index: 10, kind: input, shape index: {}]   ;;  %s4093_s11 = inlined_call_operand.hbm [shape: f32[1,32], index: 11, kind: input, shape index: {}]   ;;  %s4094_s12 = inlined_call_operand.hbm [shape: f32[1,32], index: 12, kind: input, shape index: {}]   ;;  %s4095_s13 = inlined_call_operand.vmem [shape: bf16[32,128], index: 13, kind: input, shape index: {}]   ;;  %s4096_s14 = inlined_call_operand.vmem [shape: f32[1,128], index: 14, kind: input, shape index: {}]   ;;  %s4097_s15 = inlined_call_operand.vmem [shape: bf16[128,32], index: 15, kind: input, shape index: {}]   ;;  %s4098_s16 = inlined_call_operand.vmem [shape: f32[1,32], index: 16, kind: input, shape index: {}]   ;;  %s4099_s17 = inlined_call_operand.hbm [shape: f32[32,32], index: 17, kind: output, shape index: {}]  }
   0x1   :  { %4101 = sst [smem:[#allocation21_spill]] %s4082_s0 }
   0x2   :  { %4102 = sst [smem:[#allocation22_spill]] %s4083_s1 }
   0x3   :  { %22 = vsyncpa [#allocation4], 0 }
   0x4   :  { %23 = vsyncpa [#allocation7], 0 }
   0x5   :  { %24 = vsyncpa [#allocation10], 0 }
   0x6   :  { %25 = vsyncpa [#allocation13], 0 }
   0x7   :  { %26 = vsyncpa [#allocation5], 0  ;;  %s3401_s24 = smov [#allocation6]   ;;  %s3402_s26 = smov [#allocation9]  }
   0x8   :  { %s53_s25 = sshll.u32 %s3401_s24, 4  ;;  %s73_s27 = sshll.u32 %s3402_s26, 4  ;;  %s54_s25 = int_to_ptr.vmem [resolvable:$true] %s53_s25  ;;  %s74_s27 = int_to_ptr.vmem [resolvable:$true] %s73_s27 }
   0x9   :  { %s3215_s0 = scalar_lea.hbm %s4088_s6, 16 }
   0xa   :  { %p3216_p0 = scmp.ne.s32.totalorder %s4088_s6, %s3215_s0  ;;  %p3219_p1 = scmp.lt.u32.totalorder %s3215_s0, %s4088_s6 }
   0xc   :  { %p3221_p2 = pnand %p3219_p1, %p3216_p0 }
   0xe   :  { %3224 = shalt.err (!%p3221_p2)
}
   0xf   :  { %s3225_s20 = scalar_lea.vmem %s54_s25, 16  ;;  %s3229_s21 = scalar_lea.vmem %s54_s25, 32 }
  0x10   :  { %p3226_p3 = scmp.ne.s32.totalorder %s54_s25, %s3225_s20  ;;  %p3230_p4 = scmp.lt.s32.totalorder %s54_s25, %s54_s25 }
  0x11   :  { %p3231_p5 = scmp.lt.s32.totalorder %s3229_s21, %s3225_s20 }
  0x13   :  { %p3232_p6 = por %p3231_p5, %p3230_p4 }
  0x15   :  { %p3233_p7 = pnand %p3232_p6, %p3226_p3 }
  0x17   :  { %3236 = shalt.err (!%p3233_p7)
}
  0x18   :  { %56 = dma.hbm_to_vmem [thread:$0]  %s4088_s6, 16, %s54_s25, [#allocation7]  }
  0x19   :  { %s3237_s28 = scalar_lea.hbm %s4090_s8, 16 }
  0x1a   :  { %p3238_p8 = scmp.ne.s32.totalorder %s4090_s8, %s3237_s28  ;;  %p3241_p9 = scmp.lt.u32.totalorder %s3237_s28, %s4090_s8 }
  0x1c   :  { %p3243_p10 = pnand %p3241_p9, %p3238_p8 }
  0x1e   :  { %3246 = shalt.err (!%p3243_p10)
}
  0x1f   :  { %s3247_s19 = scalar_lea.vmem %s74_s27, 16  ;;  %s3251_s1 = scalar_lea.vmem %s74_s27, 32 }
  0x20   :  { %p3248_p11 = scmp.ne.s32.totalorder %s74_s27, %s3247_s19  ;;  %p3252_p12 = scmp.lt.s32.totalorder %s74_s27, %s74_s27 }
  0x21   :  { %p3253_p13 = scmp.lt.s32.totalorder %s3251_s1, %s3247_s19 }
  0x23   :  { %p3254_p0 = por %p3253_p13, %p3252_p12 }
  0x25   :  { %p3255_p1 = pnand %p3254_p0, %p3248_p11 }
  0x27   :  { %3258 = shalt.err (!%p3255_p1)
}
  0x28   :  { %76 = dma.hbm_to_vmem [thread:$0]  %s4090_s8, 16, %s74_s27, [#allocation10]  }
  0x29   :  { %s3403_s20 = smov [#allocation12]   ;;  %s3404_s22 = smov [#allocation3]  }
  0x2a   :  { %s95_s21 = sshll.u32 %s3403_s20, 4  ;;  %s37_s23 = sshll.u32 %s3404_s22, 4  ;;  %s96_s21 = int_to_ptr.vmem [resolvable:$true] %s95_s21  ;;  %s38_s23 = int_to_ptr.vmem [resolvable:$true] %s37_s23 }
  0x2b   :  { %s3259_s28 = scalar_lea.hbm %s4093_s11, 16 }
  0x2c   :  { %p3260_p2 = scmp.ne.s32.totalorder %s4093_s11, %s3259_s28  ;;  %p3263_p3 = scmp.lt.u32.totalorder %s3259_s28, %s4093_s11 }
  0x2e   :  { %p3265_p4 = pnand %p3263_p3, %p3260_p2 }
  0x30   :  { %3268 = shalt.err (!%p3265_p4)
}
  0x31   :  { %s3269_s8 = scalar_lea.vmem %s96_s21, 16  ;;  %s3273_s27 = scalar_lea.vmem %s96_s21, 32 }
  0x32   :  { %p3270_p5 = scmp.ne.s32.totalorder %s96_s21, %s3269_s8  ;;  %p3274_p6 = scmp.lt.s32.totalorder %s96_s21, %s96_s21 }
  0x33   :  { %p3275_p7 = scmp.lt.s32.totalorder %s3273_s27, %s3269_s8 }
  0x35   :  { %p3276_p8 = por %p3275_p7, %p3274_p6 }
  0x37   :  { %p3277_p9 = pnand %p3276_p8, %p3270_p5 }
  0x39   :  { %3280 = shalt.err (!%p3277_p9)
}
  0x3a   :  { %98 = dma.hbm_to_vmem [thread:$0]  %s4093_s11, 16, %s96_s21, [#allocation13]  }
  0x3b   :  { %s3281_s20 = scalar_lea.hbm %s4084_s2, 16 }
  0x3c   :  { %p3282_p10 = scmp.ne.s32.totalorder %s4084_s2, %s3281_s20  ;;  %p3285_p11 = scmp.lt.u32.totalorder %s3281_s20, %s4084_s2 }
  0x3e   :  { %p3287_p12 = pnand %p3285_p11, %p3282_p10 }
  0x40   :  { %3290 = shalt.err (!%p3287_p12)
}
  0x41   :  { %s3291_s29 = scalar_lea.vmem %s38_s23, 16  ;;  %s3295_s0 = scalar_lea.vmem %s38_s23, 32 }
  0x42   :  { %p3292_p13 = scmp.ne.s32.totalorder %s38_s23, %s3291_s29  ;;  %p3296_p0 = scmp.lt.s32.totalorder %s38_s23, %s38_s23 }
  0x43   :  { %p3297_p1 = scmp.lt.s32.totalorder %s3295_s0, %s3291_s29 }
  0x45   :  { %p3298_p2 = por %p3297_p1, %p3296_p0 }
  0x47   :  { %p3299_p3 = pnand %p3298_p2, %p3292_p13 }
  0x49   :  { %3302 = shalt.err (!%p3299_p3)
}
  0x4a   :  { %40 = dma.hbm_to_vmem [thread:$0]  %s4084_s2, 16, %s38_s23, [#allocation4]  }
  0x4b   :  { %s3405_s30 = smov [#allocation8]   ;;  %s3406_s8 = smov [#allocation11]  }
  0x4c   :  { %s63_s18 = sshll.u32 %s3405_s30, 4  ;;  %s85_s27 = sshll.u32 %s3406_s8, 4  ;;  %s64_s18 = int_to_ptr.vmem [resolvable:$true] %s63_s18  ;;  %s86_s27 = int_to_ptr.vmem [resolvable:$true] %s85_s27 }
  0x4d   :  { %s3303_s6 = scalar_lea.hbm %s4089_s7, 16 }
  0x4e   :  { %p3304_p4 = scmp.ne.s32.totalorder %s4089_s7, %s3303_s6  ;;  %p3307_p5 = scmp.lt.u32.totalorder %s3303_s6, %s4089_s7 }
  0x50   :  { %p3309_p6 = pnand %p3307_p5, %p3304_p4 }
  0x52   :  { %3312 = shalt.err (!%p3309_p6)
}
  0x53   :  { %s3313_s2 = scalar_lea.vmem %s64_s18, 16  ;;  %s3317_s23 = scalar_lea.vmem %s64_s18, 32 }
  0x54   :  { %p3314_p7 = scmp.ne.s32.totalorder %s64_s18, %s3313_s2  ;;  %p3318_p8 = scmp.lt.s32.totalorder %s64_s18, %s64_s18 }
  0x55   :  { %p3319_p9 = scmp.lt.s32.totalorder %s3317_s23, %s3313_s2 }
  0x57   :  { %p3320_p10 = por %p3319_p9, %p3318_p8 }
  0x59   :  { %p3321_p11 = pnand %p3320_p10, %p3314_p7 }
  0x5b   :  { %3324 = shalt.err (!%p3321_p11)
}
  0x5c   :  { %66 = dma.hbm_to_vmem [thread:$0]  %s4089_s7, 16, %s64_s18, [#allocation7]  }
  0x5d   :  { %s3325_s11 = scalar_lea.hbm %s4092_s10, 16 }
  0x5e   :  { %p3326_p12 = scmp.ne.s32.totalorder %s4092_s10, %s3325_s11  ;;  %p3329_p13 = scmp.lt.u32.totalorder %s3325_s11, %s4092_s10 }
  0x60   :  { %p3331_p0 = pnand %p3329_p13, %p3326_p12 }
  0x62   :  { %3334 = shalt.err (!%p3331_p0)
}
  0x63   :  { %s3335_s1 = scalar_lea.vmem %s86_s27, 16  ;;  %s3339_s6 = scalar_lea.vmem %s86_s27, 32 }
  0x64   :  { %p3336_p1 = scmp.ne.s32.totalorder %s86_s27, %s3335_s1  ;;  %p3340_p2 = scmp.lt.s32.totalorder %s86_s27, %s86_s27 }
  0x65   :  { %p3341_p3 = scmp.lt.s32.totalorder %s3339_s6, %s3335_s1 }
  0x67   :  { %p3342_p4 = por %p3341_p3, %p3340_p2 }
  0x69   :  { %p3343_p5 = pnand %p3342_p4, %p3336_p1 }
  0x6b   :  { %3346 = shalt.err (!%p3343_p5)
}
  0x6c   :  { %88 = dma.hbm_to_vmem [thread:$0]  %s4092_s10, 16, %s86_s27, [#allocation10]  }
  0x6d   :  { %s3407_s25 = smov [#allocation14]   ;;  %s3347_s2 = scalar_lea.hbm %s4094_s12, 16 }
  0x6e   :  { %s105_s20 = sshll.u32 %s3407_s25, 4  ;;  %p3348_p6 = scmp.ne.s32.totalorder %s4094_s12, %s3347_s2  ;;  %s106_s20 = int_to_ptr.vmem [resolvable:$true] %s105_s20 }
  0x6f   :  { %p3351_p7 = scmp.lt.u32.totalorder %s3347_s2, %s4094_s12 }
  0x71   :  { %p3353_p8 = pnand %p3351_p7, %p3348_p6 }
  0x73   :  { %3356 = shalt.err (!%p3353_p8)
}
  0x74   :  { %s3357_s0 = scalar_lea.vmem %s106_s20, 16  ;;  %s3361_s10 = scalar_lea.vmem %s106_s20, 32 }
  0x75   :  { %p3358_p9 = scmp.ne.s32.totalorder %s106_s20, %s3357_s0  ;;  %p3362_p10 = scmp.lt.s32.totalorder %s106_s20, %s106_s20 }
  0x76   :  { %p3363_p11 = scmp.lt.s32.totalorder %s3361_s10, %s3357_s0 }
  0x78   :  { %p3364_p12 = por %p3363_p11, %p3362_p10 }
  0x7a   :  { %p3365_p13 = pnand %p3364_p12, %p3358_p9 }
  0x7c   :  { %3368 = shalt.err (!%p3365_p13)
}
  0x7d   :  { %108 = dma.hbm_to_vmem [thread:$0]  %s4094_s12, 16, %s106_s20, [#allocation13]  }
  0x7e   :  { %3391 = dma.done.wait [#allocation4], 16  }
  0x7f   :  { %3392 = vsyncadd [#allocation4], 4294967280 }
  0x80   :  { %3393 = dma.done.wait [#allocation7], 32  }
  0x81   :  { %3394 = vsyncadd [#allocation7], 4294967264 }
  0x82   :  { %3395 = dma.done.wait [#allocation10], 32  }
  0x83   :  { %3396 = vsyncadd [#allocation10], 4294967264 }
  0x84   :  { %3397 = dma.done.wait [#allocation13], 32  }
  0x85   :  { %3398 = vsyncadd [#allocation13], 4294967264  ;;  %vm145_vm0 = vcmask 261120   ;;  %s4103_s8 = sld [smem:[#allocation21_spill]]  ;;  %v3105_v28 = vld [vmem:[%s4085_s3] sm:$0xff]   ;;  %v3106_v29 = vld [vmem:[%s4085_s3 + $0x8] sm:$0xff]  }
  0x86   :  { %2836 = vmatprep.subr.bf16.mxu0 %v3105_v28  ;;  %v3107_v30 = vld [vmem:[%s4086_s4] sm:$0xff]   ;;  %s4104_s28 = sld [smem:[#allocation22_spill]]  ;;  %v2673_v51 = vld [vmem:[#allocation3] ss:$0 sm:$0xff]  ;;  %v3108_v63 = vld [vmem:[%s4086_s4 + $0x8] sm:$0xff]   ;;  %vm3409_vm1 = vmmov 0  }
  0x87   :  { %2837 = vmatpush3.bf16.msra.mxu0 %v3105_v28  ;;  %vm455_vm2 = vcmask 64512   ;;  %vm691_vm3 = vcmask 1043456   ;;  %s3410_s4 = smov 120   ;;  %s3412_s30 = smov 104   ;;  %vm1339_vm4 = vcmask 130112   ;;  %vm1792_vm5 = vcmask 195712  }
  0x88   :  { %2838 = vmatprep.subr.bf16.mxu0 %v3106_v29  ;;  %s3413_s19 = smov 8   ;;  %s3414_s1 = smov 16   ;;  %vm2245_vm6 = vcmask 261312  }
  0x89   :  { %s3415_s6 = smov 24   ;;  %s3416_s2 = smov [#allocation15]  }
  0x8a   :  { %s2657_s23 = sshll.u32 %s3416_s2, 4  ;;  %s2658_s23 = int_to_ptr.vmem [resolvable:$true] %s2657_s23 }
  0x8b   :  { %v139_v0 = vld [vmem:[%s4103_s8] sm:$0xff]  ;;  %v141_v1 = vld [vmem:[%s4103_s8 + $0x10] sm:$0xff]  ;;  %v140_v2 = vld [vmem:[%s4103_s8 + $0x8] sm:$0xff]  ;;  %2839 = vmatpush3.bf16.msra.mxu0 %v3106_v29  ;;  %p3374_p1 = scmp.lt.s32.totalorder %s2658_s23, %s2658_s23 }
  0x8c   :  { %v146_v3 = vsel %vm145_vm0, %v139_v0, 0.0  ;;  %v152_v4 = vsel %vm145_vm0, %v141_v1, 0.0  ;;  %v142_v5 = vld [vmem:[%s4103_s8 + $0x18] sm:$0xff]  ;;  %v149_v6 = vsel %vm145_vm0, %v140_v2, 0.0  ;;  %2844 = vmatprep.subr.bf16.mxu0 %v3107_v30  ;;  %v2672_v45 = vld [vmem:[%s4104_s28] ss:$0 sm:$0xff] }
  0x8d   :  { %147 = vadd.xlane.f32.xlu0 %v146_v3  ;;  %153 = vadd.xlane.f32.xlu1 %v152_v4  ;;  %v155_v7 = vsel %vm145_vm0, %v142_v5, 0.0 }
  0x91   :  { %150 = vadd.xlane.f32.xlu0 %v149_v6  ;;  %156 = vadd.xlane.f32.xlu1 %v155_v7  ;;  %v2679_v7 = vld [vmem:[#allocation8] ss:$0 sm:$0xff] }
 0x11a   :  { %v148_v8 = vpop.xlane.xlu0 %147  ;;  %v154_v9 = vpop.xlane.xlu1 %153 }
 0x11b   :  { %v159_v10 = vmul.f32 0.03125, %v148_v8  ;;  %v161_v11 = vmul.f32 0.03125, %v154_v9 }
 0x11d   :  { %v163_v12 = vsub.f32 %v139_v0, %v159_v10  ;;  %v165_v13 = vsub.f32 %v141_v1, %v161_v11  ;;  %v3109_v0 = vld [vmem:[%s4087_s5] sm:$0xff]   ;;  %v3110_v1 = vld [vmem:[%s4087_s5 + $0x8] sm:$0xff]   ;;  %s3411_s5 = smov 112  }
 0x11e   :  { %v151_v14 = vpop.xlane.xlu0 %150  ;;  %v157_v15 = vpop.xlane.xlu1 %156 }
 0x11f   :  { %v160_v16 = vmul.f32 0.03125, %v151_v14  ;;  %v162_v17 = vmul.f32 0.03125, %v157_v15  ;;  %v167_v18 = vmul.f32 %v163_v12, %v163_v12  ;;  %v169_v19 = vmul.f32 %v165_v13, %v165_v13  ;;  %v2674_v15 = vld [vmem:[#allocation6] ss:$0 sm:$0xff] }
 0x121   :  { %v164_v20 = vsub.f32 %v140_v2, %v160_v16  ;;  %v166_v21 = vsub.f32 %v142_v5, %v162_v17  ;;  %v171_v22 = vsel %vm145_vm0, %v167_v18, 0.0  ;;  %v177_v23 = vsel %vm145_vm0, %v169_v19, 0.0  ;;  %v2684_v19 = vld [vmem:[#allocation9] ss:$0 sm:$0xff] }
 0x122   :  { %172 = vadd.xlane.f32.xlu0 %v171_v22  ;;  %v3408_v2 = vmov 0.0  }
 0x123   :  { %v168_v24 = vmul.f32 %v164_v20, %v164_v20  ;;  %v170_v25 = vmul.f32 %v166_v21, %v166_v21  ;;  %2860 = vmatprep.subr.bf16.mxu1 %v3408_v2  ;;  %2862 = vmatprep.mubr.msk.bf16.mxu1 %vm3409_vm1, %v3408_v2 }
 0x125   :  { %v174_v26 = vsel %vm145_vm0, %v168_v24, 0.0  ;;  %v180_v27 = vsel %vm145_vm0, %v170_v25, 0.0 }
 0x126   :  { %178 = vadd.xlane.f32.xlu0 %v177_v23  ;;  %175 = vadd.xlane.f32.xlu1 %v174_v26 }
 0x12a   :  { %181 = vadd.xlane.f32.xlu1 %v180_v27 }
 0x1af   :  { %v173_v31 = vpop.xlane.xlu0 %172 }
 0x1b0   :  { %v183_v32 = vmul.f32 0.03125, %v173_v31 }
 0x1b2   :  { %v187_v33 = vadd.f32 1e-05, %v183_v32 }
 0x1b3   :  { %v176_v34 = vpop.xlane.xlu1 %175  ;;  %v179_v35 = vpop.xlane.xlu0 %178 }
 0x1b4   :  { %3123 = vrsqrt.f32 %v187_v33  ;;  %v184_v36 = vmul.f32 0.03125, %v176_v34  ;;  %v185_v37 = vmul.f32 0.03125, %v179_v35 }
 0x1b6   :  { %v188_v38 = vadd.f32 1e-05, %v184_v36  ;;  %v189_v39 = vadd.f32 1e-05, %v185_v37 }
 0x1b7   :  { %v182_v40 = vpop.xlane.xlu1 %181 }
 0x1b8   :  { %3125 = vrsqrt.f32 %v188_v38  ;;  %v186_v41 = vmul.f32 0.03125, %v182_v40 }
 0x1b9   :  { %3127 = vrsqrt.f32 %v189_v39 }
 0x1ba   :  { %v190_v42 = vadd.f32 1e-05, %v186_v41 }
 0x1bc   :  { %3129 = vrsqrt.f32 %v190_v42 }
 0x1be   :  { %v3124_v43 = vpop.eup %3123 }
 0x1bf   :  { %v195_v44 = vmul.f32 %v3124_v43, %v163_v12 }
 0x1c1   :  { %v205_v49 = vmul.f32 %v2672_v45, %v195_v44 }
 0x1c2   :  { %v3126_v46 = vpop.eup %3125 }
 0x1c3   :  { %v3128_v47 = vpop.eup %3127  ;;  %v196_v48 = vmul.f32 %v3126_v46, %v164_v20  ;;  %v215_v55 = vadd.f32 %v2673_v51, %v205_v49 }
 0x1c4   :  { %v197_v50 = vmul.f32 %v3128_v47, %v165_v13 }
 0x1c5   :  { %v206_v52 = vmul.f32 %v2672_v45, %v196_v48 }
 0x1c6   :  { %v3130_v53 = vpop.eup %3129  ;;  %v207_v57 = vmul.f32 %v2672_v45, %v197_v50 }
 0x1c7   :  { %v198_v54 = vmul.f32 %v3130_v53, %v166_v21  ;;  %v216_v56 = vadd.f32 %v2673_v51, %v206_v52 }
 0x1c8   :  { %v217_v60 = vadd.f32 %v2673_v51, %v207_v57 }
 0x1c9   :  { %v219_v58 = vpack.c.bf16 %v216_v56, %v215_v55  ;;  %v208_v59 = vmul.f32 %v2672_v45, %v198_v54 }
 0x1cb   :  { %2840 = vmatprep.mubr.msk.bf16.mxu0 %vm145_vm0, %v219_v58  ;;  %v218_v61 = vadd.f32 %v2673_v51, %v208_v59 }
 0x1cd   :  { %v220_v62 = vpack.c.bf16 %v218_v61, %v217_v60 }
 0x1cf   :  { %2841 = vmatmul.mubr.msk.bf16.vlgmr.msra.gmra.mrb[0].mxu0 %vm145_vm0, %v220_v62 }
 0x1d0   :  { %2845 = vmatpush3.bf16.msra.mxu0 %v3107_v30  ;;  %2848 = vmatprep.mubr.msk.bf16.mxu0 %vm145_vm0, %v219_v58 }
 0x1d1   :  { %2846 = vmatprep.subr.bf16.mxu0 %v3108_v63 }
 0x1d4   :  { %2847 = vmatpush3.bf16.msra.mxu0 %v3108_v63 }
 0x1d5   :  { %2852 = vmatprep.subr.bf16.mxu0 %v3109_v0 }
 0x1d7   :  { %2849 = vmatmul.mubr.msk.bf16.vlgmr.msra.gmra.mrb[4].mxu0 %vm145_vm0, %v220_v62 }
 0x1d8   :  { %2853 = vmatpush3.bf16.msra.mxu0 %v3109_v0  ;;  %2856 = vmatprep.mubr.msk.bf16.mxu0 %vm145_vm0, %v219_v58 }
 0x1d9   :  { %2854 = vmatprep.subr.bf16.mxu0 %v3110_v1 }
 0x1dc   :  { %2855 = vmatpush3.bf16.msra.mxu0 %v3110_v1 }
 0x1dd   :  { %2866 = vmatprep.subr.bf16.mxu0 %v3408_v2 }
 0x1df   :  { %2857 = vmatmul.mubr.msk.bf16.vlgmr.msra.gmra.mrb[8].mxu0 %vm145_vm0, %v220_v62 }
 0x1e0   :  { %2868 = vmatprep.mubr.msk.bf16.mxu0 %vm3409_vm1, %v3408_v2 }
 0x2a2   :  { %v2842_v3 = vpop.f32.mrb[0].mxu0 }
 0x2a3   :  { %v284_v4 = vpop.f32.mrb[1].mxu0  ;;  %v293_v36 = vadd.f32 %v2842_v3, %v2674_v15 }
 0x2a4   :  { %v2843_v5 = vpop.f32.mrb[2].mxu0  ;;  %v285_v20 = vadd.f32 %v2674_v15, %v284_v4 }
 0x2a5   :  { %v287_v6 = vpop.f32.mrb[3].mxu0  ;;  %v296_v39 = vadd.f32 %v2843_v5, %v2674_v15  ;;  %v3683_v41 = vpack.c.bf16 %v293_v36, %v293_v36 }
 0x2a6   :  { %v288_v26 = vadd.f32 %v2674_v15, %v287_v6  ;;  %v3661_v31 = vpack.c.bf16 %v285_v20, %v285_v20 }
 0x2a7   :  { %v3687_v43 = vpack.c.bf16 %v296_v39, %v296_v39 }
 0x2a8   :  { %v3665_v33 = vpack.c.bf16 %v288_v26, %v288_v26 }
 0x2aa   :  { %v2850_v8 = vpop.f32.mrb[4].mxu0 }
 0x2ab   :  { %v356_v9 = vpop.f32.mrb[5].mxu0  ;;  %v365_v16 = vadd.f32 %v2850_v8, %v2679_v7 }
 0x2ac   :  { %v357_v10 = vadd.f32 %v2679_v7, %v356_v9  ;;  %v2851_v11 = vpop.f32.mrb[6].mxu0 }
 0x2ad   :  { %v359_v12 = vpop.f32.mrb[7].mxu0  ;;  %v368_v21 = vadd.f32 %v2851_v11, %v2679_v7  ;;  %v3656_v27 = vpack.c.bf16 %v365_v16, %v365_v16 }
 0x2ae   :  { %v3645_v13 = vpack.c.bf16 %v357_v10, %v357_v10  ;;  %v360_v14 = vadd.f32 %v2679_v7, %v359_v12 }
 0x2af   :  { %v3663_v32 = vpack.c.bf16 %v368_v21, %v368_v21  ;;  %v552_v35 = vsel %vm455_vm2, %v3656_v27, 0 }
 0x2b0   :  { %v3647_v17 = vpack.c.bf16 %v360_v14, %v360_v14  ;;  %v460_v18 = vsel %vm455_vm2, %v3645_v13, 0 }
 0x2b1   :  { %2861 = vmatpush3.bf16.xpose.msra.mxu1 %v460_v18  ;;  %v598_v38 = vsel %vm455_vm2, %v3663_v32, 0 }
 0x2b2   :  { %v2858_v22 = vpop.f32.mrb[8].mxu0  ;;  %v506_v23 = vsel %vm455_vm2, %v3647_v17, 0  ;;  %2872 = vmatprep.subr.bf16.mxu1 %v3408_v2 }
 0x2b3   :  { %v3654_v24 = vadd.f32 %v2858_v22, %v2684_v19  ;;  %v428_v25 = vpop.f32.mrb[9].mxu0  ;;  %2867 = vmatpush3.bf16.xpose.msra.mxu0 %v506_v23 }
 0x2b4   :  { %v2859_v28 = vpop.f32.mrb[10].mxu0  ;;  %2878 = vmatprep.subr.bf16.mxu0 %v3408_v2  ;;  %v429_v34 = vadd.f32 %v2684_v19, %v428_v25 }
 0x2b5   :  { %v3659_v29 = vadd.f32 %v2859_v28, %v2684_v19  ;;  %v431_v30 = vpop.f32.mrb[11].mxu0 }
 0x2b6   :  { %v432_v37 = vadd.f32 %v2684_v19, %v431_v30  ;;  %v3680_v40 = vpack.c.bf16 %v429_v34, %v429_v34 }
 0x2b8   :  { %2863 = vmatmul.mubr.msk.bf16.vlgmr.msra.gmra.mrb[0].mxu1 %vm455_vm2, %v3661_v31  ;;  %v3685_v42 = vpack.c.bf16 %v432_v37, %v432_v37  ;;  %v693_v44 = vsel %vm691_vm3, %v3680_v40, 0 }
 0x2b9   :  { %2873 = vmatpush3.bf16.xpose.msra.mxu1 %v552_v35  ;;  %2874 = vmatprep.mubr.msk.bf16.mxu1 %vm3409_vm1, %v3408_v2  ;;  %v3729_v35 = vpack.c.bf16 %v3654_v24, %v3654_v24 }
 0x2ba   :  { %2869 = vmatmul.mubr.msk.bf16.vlgmr.msra.gmra.mrb[12].mxu0 %vm455_vm2, %v3665_v33  ;;  %2884 = vmatprep.subr.bf16.mxu1 %v3408_v2  ;;  %v739_v45 = vsel %vm691_vm3, %v3685_v42, 0 }
 0x2bb   :  { %2879 = vmatpush3.bf16.xpose.msra.mxu0 %v598_v38  ;;  %2880 = vmatprep.mubr.msk.bf16.mxu0 %vm3409_vm1, %v3408_v2  ;;  %v3733_v38 = vpack.c.bf16 %v3659_v29, %v3659_v29 }
 0x2bc   :  { %2890 = vmatprep.subr.bf16.mxu0 %v3408_v2 }
 0x2bd   :  { %v831_v24 = vsel %vm691_vm3, %v3733_v38, 0 }
 0x2c0   :  { %2875 = vmatmul.mubr.msk.bf16.vlgmr.msra.gmra.mrb[4].mxu1 %vm455_vm2, %v3683_v41 }
 0x2c1   :  { %2885 = vmatpush3.bf16.msra.mxu1 %v693_v44  ;;  %2886 = vmatprep.mubr.msk.bf16.mxu1 %vm3409_vm1, %v3408_v2 }
 0x2c2   :  { %2881 = vmatmul.mubr.msk.bf16.vlgmr.msra.gmra.mrb[16].mxu0 %vm455_vm2, %v3687_v43  ;;  %2896 = vmatprep.subr.bf16.mxu1 %v3408_v2 }
 0x2c3   :  { %2891 = vmatpush3.bf16.msra.mxu0 %v739_v45  ;;  %2892 = vmatprep.mubr.msk.bf16.mxu0 %vm3409_vm1, %v3408_v2  ;;  %v785_v45 = vsel %vm691_vm3, %v3729_v35, 0 }
 0x2c4   :  { %2902 = vmatprep.subr.bf16.mxu0 %v3408_v2 }
 0x38b   :  { %v496_v46 = vpop.f32.mrb[0].mxu1 }
 0x38c   :  { %v2864_v47 = vpop.f32.mrb[1].mxu1  ;;  %v640_v48 = vsel %vm455_vm2, %v496_v46, -inf }
 0x38d   :  { %v542_v49 = vpop.f32.mrb[12].mxu0  ;;  %641 = vmax.xlane.f32.xlu0 %v640_v48  ;;  %v499_v50 = vpop.f32.mrb[2].mxu1 }
 0x38e   :  { %v2865_v51 = vpop.f32.mrb[3].mxu1  ;;  %v2870_v52 = vpop.f32.mrb[13].mxu0  ;;  %v643_v53 = vsel %vm455_vm2, %v542_v49, -inf }
 0x38f   :  { %644 = vmax.xlane.f32.xlu1 %v643_v53  ;;  %v545_v54 = vpop.f32.mrb[14].mxu0 }
 0x390   :  { %v2871_v55 = vpop.f32.mrb[15].mxu0 }
 0x393   :  { %v588_v56 = vpop.f32.mrb[4].mxu1 }
 0x394   :  { %v2876_v57 = vpop.f32.mrb[5].mxu1  ;;  %v646_v58 = vsel %vm455_vm2, %v588_v56, -inf }
 0x395   :  { %v634_v59 = vpop.f32.mrb[16].mxu0  ;;  %647 = vmax.xlane.f32.xlu0 %v646_v58  ;;  %v591_v60 = vpop.f32.mrb[6].mxu1 }
 0x396   :  { %v2877_v61 = vpop.f32.mrb[7].mxu1  ;;  %v2882_v62 = vpop.f32.mrb[17].mxu0  ;;  %v649_v63 = vsel %vm455_vm2, %v634_v59, -inf }
 0x397   :  { %650 = vmax.xlane.f32.xlu1 %v649_v63  ;;  %v637_v0 = vpop.f32.mrb[18].mxu0 }
 0x398   :  { %v2883_v1 = vpop.f32.mrb[19].mxu0 }
 0x41a   :  { %v642_v3 = vpop.xlane.xlu0 %641 }
 0x41b   :  { %v652_v4 = vsub.f32 %v496_v46, %v642_v3 }
 0x41c   :  { %v645_v5 = vpop.xlane.xlu1 %644 }
 0x41d   :  { %v656_v6 = vmul.f32 1.442695, %v652_v4  ;;  %v653_v7 = vsub.f32 %v542_v49, %v645_v5 }
 0x41f   :  { %3131 = vpow2.f32 %v656_v6  ;;  %v658_v8 = vmul.f32 1.442695, %v653_v7 }
 0x421   :  { %3133 = vpow2.f32 %v658_v8 }
 0x422   :  { %v648_v9 = vpop.xlane.xlu0 %647 }
 0x423   :  { %v654_v10 = vsub.f32 %v588_v56, %v648_v9 }
 0x424   :  { %v651_v20 = vpop.xlane.xlu1 %650 }
 0x425   :  { %v660_v11 = vmul.f32 1.442695, %v654_v10  ;;  %v655_v21 = vsub.f32 %v634_v59, %v651_v20 }
 0x427   :  { %3135 = vpow2.f32 %v660_v11  ;;  %v662_v22 = vmul.f32 1.442695, %v655_v21 }
 0x429   :  { %v3132_v12 = vpop.eup %3131  ;;  %3137 = vpow2.f32 %v662_v22 }
 0x42a   :  { %v664_v14 = vsel %vm455_vm2, %v3132_v12, 0.0 }
 0x42b   :  { %v3134_v15 = vpop.eup %3133  ;;  %665 = vadd.xlane.f32.xlu0 %v664_v14 }
 0x42c   :  { %v667_v16 = vsel %vm455_vm2, %v3134_v15, 0.0 }
 0x42d   :  { %668 = vadd.xlane.f32.xlu1 %v667_v16 }
 0x431   :  { %v3136_v18 = vpop.eup %3135 }
 0x432   :  { %v670_v19 = vsel %vm455_vm2, %v3136_v18, 0.0 }
 0x433   :  { %671 = vadd.xlane.f32.xlu0 %v670_v19  ;;  %v3138_v23 = vpop.eup %3137 }
 0x434   :  { %v673_v25 = vsel %vm455_vm2, %v3138_v23, 0.0 }
 0x43e   :  { %933 = vrot.lane.b32.xlu1 %v3647_v17, %s3410_s4 }
 0x442   :  { %878 = vrot.lane.b32.xlu1 %v3661_v31, %s3410_s4 }
 0x449   :  { %881 = vrot.lane.b32.xlu0 %v3645_v13, %s3410_s4 }
 0x44d   :  { %985 = vrot.lane.b32.xlu0 %v3656_v27, %s3410_s4 }
 0x451   :  { %982 = vrot.lane.b32.xlu0 %v3683_v41, %s3410_s4 }
 0x466   :  { %674 = vadd.xlane.f32.xlu1 %v673_v25 }
 0x477   :  { %930 = vrot.lane.b32.xlu1 %v3665_v33, %s3410_s4 }
 0x47b   :  { %1037 = vrot.lane.b32.xlu1 %v3663_v32, %s3410_s4 }
 0x47f   :  { %1034 = vrot.lane.b32.xlu1 %v3687_v43, %s3410_s4 }
 0x4b8   :  { %v666_v26 = vpop.xlane.xlu0 %665 }
 0x4b9   :  { %3139 = vrcp.f32 %v666_v26 }
 0x4ba   :  { %v669_v28 = vpop.xlane.xlu1 %668 }
 0x4bb   :  { %3141 = vrcp.f32 %v669_v28 }
 0x4be   :  { %v934_v51 = vpop.permute.xlu1 %933 }
 0x4bf   :  { %v939_v61 = vsel %vm455_vm2, %v934_v51, 0 }
 0x4c0   :  { %v672_v30 = vpop.xlane.xlu0 %671 }
 0x4c1   :  { %3143 = vrcp.f32 %v672_v30 }
 0x4c2   :  { %v879_v53 = vpop.permute.xlu1 %878 }
 0x4c3   :  { %v3140_v34 = vpop.eup %3139 }
 0x4c4   :  { %v680_v36 = vmul.f32 %v3140_v34, %v3132_v12  ;;  %v882_v48 = vpop.permute.xlu0 %881 }
 0x4c5   :  { %v3142_v37 = vpop.eup %3141  ;;  %v887_v50 = vsel %vm455_vm2, %v882_v48, 0 }
 0x4c6   :  { %v681_v39 = vmul.f32 %v3142_v37, %v3134_v15  ;;  %v684_v44 = vpack.c.bf16 %v680_v36, %v680_v36 }
 0x4c8   :  { %2887 = vmatmul.mubr.msk.bf16.vlgmr.msra.gmra.mrb[8].mxu1 %vm455_vm2, %v684_v44  ;;  %v685_v46 = vpack.c.bf16 %v681_v39, %v681_v39  ;;  %v986_v52 = vpop.permute.xlu0 %985 }
 0x4c9   :  { %2897 = vmatpush3.bf16.msra.mxu1 %v785_v45  ;;  %2898 = vmatprep.mubr.msk.bf16.mxu1 %vm3409_vm1, %v3408_v2  ;;  %v991_v54 = vsel %vm455_vm2, %v986_v52, 0 }
 0x4ca   :  { %2893 = vmatmul.mubr.msk.bf16.vlgmr.msra.gmra.mrb[20].mxu0 %vm455_vm2, %v685_v46  ;;  %2908 = vmatprep.subr.bf16.mxu1 %v3408_v2 }
 0x4cb   :  { %v3144_v29 = vpop.eup %3143  ;;  %2903 = vmatpush3.bf16.msra.mxu0 %v831_v24  ;;  %2904 = vmatprep.mubr.msk.bf16.mxu0 %vm3409_vm1, %v3408_v2 }
 0x4cc   :  { %v682_v47 = vmul.f32 %v3144_v29, %v3136_v18  ;;  %2914 = vmatprep.subr.bf16.mxu0 %v3408_v2  ;;  %v983_v55 = vpop.permute.xlu0 %982 }
 0x4ce   :  { %v686_v49 = vpack.c.bf16 %v682_v47, %v682_v47 }
 0x4d0   :  { %2899 = vmatmul.mubr.msk.bf16.vlgmr.msra.gmra.mrb[12].mxu1 %vm455_vm2, %v686_v49 }
 0x4d1   :  { %2910 = vmatprep.mubr.msk.bf16.mxu1 %vm3409_vm1, %v3408_v2 }
 0x4d2   :  { %2909 = vmatpush3.bf16.xpose.msra.mxu1 %v887_v50 }
 0x4d3   :  { %2920 = vmatprep.subr.bf16.mxu1 %v3408_v2 }
 0x4d9   :  { %2911 = vmatmul.mubr.msk.bf16.vlgmr.msra.gmra.mrb[16].mxu1 %vm455_vm2, %v879_v53 }
 0x4da   :  { %2921 = vmatpush3.bf16.xpose.msra.mxu1 %v991_v54  ;;  %2922 = vmatprep.mubr.msk.bf16.mxu1 %vm3409_vm1, %v3408_v2 }
 0x4db   :  { %2932 = vmatprep.subr.bf16.mxu1 %v3408_v2 }
 0x4e1   :  { %2923 = vmatmul.mubr.msk.bf16.vlgmr.msra.gmra.mrb[20].mxu1 %vm455_vm2, %v983_v55 }
 0x4e2   :  { %2934 = vmatprep.mubr.msk.bf16.mxu1 %vm3409_vm1, %v3408_v2 }
 0x4f3   :  { %v675_v56 = vpop.xlane.xlu1 %674 }
 0x4f4   :  { %3145 = vrcp.f32 %v675_v56 }
 0x4f7   :  { %v931_v60 = vpop.permute.xlu1 %930 }
 0x4fb   :  { %v1038_v62 = vpop.permute.xlu1 %1037 }
 0x4fc   :  { %v1043_v63 = vsel %vm455_vm2, %v1038_v62, 0 }
 0x4fe   :  { %v3146_v57 = vpop.eup %3145 }
 0x4ff   :  { %v683_v58 = vmul.f32 %v3146_v57, %v3138_v23  ;;  %v1035_v0 = vpop.permute.xlu1 %1034 }
 0x501   :  { %v687_v59 = vpack.c.bf16 %v683_v58, %v683_v58 }
 0x503   :  { %2905 = vmatmul.mubr.msk.bf16.vlgmr.msra.gmra.mrb[24].mxu0 %vm455_vm2, %v687_v59 }
 0x504   :  { %2915 = vmatpush3.bf16.xpose.msra.mxu0 %v939_v61  ;;  %2916 = vmatprep.mubr.msk.bf16.mxu0 %vm3409_vm1, %v3408_v2 }
 0x505   :  { %2926 = vmatprep.subr.bf16.mxu0 %v3408_v2 }
 0x50b   :  { %2917 = vmatmul.mubr.msk.bf16.vlgmr.msra.gmra.mrb[28].mxu0 %vm455_vm2, %v931_v60 }
 0x50c   :  { %2927 = vmatpush3.bf16.xpose.msra.mxu0 %v1043_v63  ;;  %2928 = vmatprep.mubr.msk.bf16.mxu0 %vm3409_vm1, %v3408_v2 }
 0x50d   :  { %2938 = vmatprep.subr.bf16.mxu0 %v3408_v2 }
 0x513   :  { %2929 = vmatmul.mubr.msk.bf16.vlgmr.msra.gmra.mrb[32].mxu0 %vm455_vm2, %v1035_v0 }
 0x514   :  { %2940 = vmatprep.mubr.msk.bf16.mxu0 %vm3409_vm1, %v3408_v2 }
 0x59b   :  { %v729_v1 = vpop.f32.mrb[8].mxu1 }
 0x59c   :  { %v2888_v3 = vpop.f32.mrb[9].mxu1 }
 0x59d   :  { %v732_v4 = vpop.f32.mrb[10].mxu1  ;;  %v775_v5 = vpop.f32.mrb[20].mxu0 }
 0x59e   :  { %v873_v6 = vpack.c.bf16 %v775_v5, %v729_v1  ;;  %v2889_v7 = vpop.f32.mrb[11].mxu1  ;;  %v2894_v8 = vpop.f32.mrb[21].mxu0 }
 0x59f   :  { %v778_v9 = vpop.f32.mrb[22].mxu0 }
 0x5a0   :  { %875 = vst.msk [vmem:[#allocation2] sm:$0xff] %vm455_vm2, %v873_v6  ;;  %v2895_v10 = vpop.f32.mrb[23].mxu0 }
 0x5a3   :  { %v821_v11 = vpop.f32.mrb[12].mxu1 }
 0x5a4   :  { %v2900_v12 = vpop.f32.mrb[13].mxu1 }
 0x5a5   :  { %v824_v14 = vpop.f32.mrb[14].mxu1 }
 0x5a6   :  { %v2901_v15 = vpop.f32.mrb[15].mxu1 }
 0x5ac   :  { %v923_v16 = vpop.f32.mrb[16].mxu1 }
 0x5ad   :  { %v2912_v18 = vpop.f32.mrb[17].mxu1  ;;  %v1085_v19 = vsel %vm455_vm2, %v923_v16, -inf }
 0x5ae   :  { %1086 = vmax.xlane.f32.xlu0 %v1085_v19  ;;  %v926_v20 = vpop.f32.mrb[18].mxu1 }
 0x5af   :  { %v2913_v21 = vpop.f32.mrb[19].mxu1 }
 0x5b4   :  { %v1027_v22 = vpop.f32.mrb[20].mxu1 }
 0x5b5   :  { %v2924_v23 = vpop.f32.mrb[21].mxu1  ;;  %v1091_v25 = vsel %vm455_vm2, %v1027_v22, -inf }
 0x5b6   :  { %1092 = vmax.xlane.f32.xlu0 %v1091_v25  ;;  %v1030_v26 = vpop.f32.mrb[22].mxu1 }
 0x5b7   :  { %v2925_v28 = vpop.f32.mrb[23].mxu1 }
 0x5d6   :  { %v867_v30 = vpop.f32.mrb[24].mxu0 }
 0x5d7   :  { %v874_v34 = vpack.c.bf16 %v867_v30, %v821_v11  ;;  %v2906_v36 = vpop.f32.mrb[25].mxu0 }
 0x5d8   :  { %v870_v37 = vpop.f32.mrb[26].mxu0 }
 0x5d9   :  { %876 = vst.msk [vmem:[#allocation2 + $0x8] sm:$0xff] %vm455_vm2, %v874_v34  ;;  %v2907_v39 = vpop.f32.mrb[27].mxu0 }
 0x5de   :  { %v975_v44 = vpop.f32.mrb[28].mxu0 }
 0x5df   :  { %v2918_v45 = vpop.f32.mrb[29].mxu0  ;;  %v1088_v46 = vsel %vm455_vm2, %v975_v44, -inf }
 0x5e0   :  { %1089 = vmax.xlane.f32.xlu1 %v1088_v46  ;;  %v978_v24 = vpop.f32.mrb[30].mxu0 }
 0x5e1   :  { %v2919_v29 = vpop.f32.mrb[31].mxu0 }
 0x5e6   :  { %v1079_v47 = vpop.f32.mrb[32].mxu0 }
 0x5e7   :  { %v2930_v48 = vpop.f32.mrb[33].mxu0  ;;  %v1094_v49 = vsel %vm455_vm2, %v1079_v47, -inf }
 0x5e8   :  { %v1082_v50 = vpop.f32.mrb[34].mxu0  ;;  %1095 = vmax.xlane.f32.xlu0 %v1094_v49 }
 0x5e9   :  { %v2931_v51 = vpop.f32.mrb[35].mxu0 }
 0x5f1   :  { %1183 = vrot.lane.b32.xlu1 %v3685_v42, %s3410_s4 }
 0x5f5   :  { %1232 = vrot.lane.b32.xlu1 %v3729_v35, %s3410_s4 }
 0x5f9   :  { %1281 = vrot.lane.b32.xlu1 %v3733_v38, %s3410_s4 }
 0x63b   :  { %v1087_v52 = vpop.xlane.xlu0 %1086 }
 0x63c   :  { %v1097_v53 = vsub.f32 %v923_v16, %v1087_v52 }
 0x63e   :  { %v1101_v54 = vmul.f32 1.442695, %v1097_v53 }
 0x640   :  { %3147 = vpow2.f32 %v1101_v54 }
 0x643   :  { %v1093_v57 = vpop.xlane.xlu0 %1092 }
 0x644   :  { %v1099_v58 = vsub.f32 %v1027_v22, %v1093_v57 }
 0x646   :  { %v1105_v61 = vmul.f32 1.442695, %v1099_v58 }
 0x64a   :  { %v3148_v55 = vpop.eup %3147 }
 0x64b   :  { %v1109_v56 = vsel %vm455_vm2, %v3148_v55, 0.0 }
 0x64c   :  { %1110 = vadd.xlane.f32.xlu0 %v1109_v56 }
 0x662   :  { %1134 = vrot.lane.b32.xlu0 %v3680_v40, %s3410_s4 }
 0x66d   :  { %v1090_v59 = vpop.xlane.xlu1 %1089 }
 0x66e   :  { %v1098_v60 = vsub.f32 %v975_v44, %v1090_v59 }
 0x670   :  { %v1103_v62 = vmul.f32 1.442695, %v1098_v60 }
 0x671   :  { %v1184_v63 = vpop.permute.xlu1 %1183 }
 0x672   :  { %3149 = vpow2.f32 %v1103_v62  ;;  %v1189_v0 = vsel %vm691_vm3, %v1184_v63, 0 }
 0x673   :  { %3151 = vpow2.f32 %v1105_v61  ;;  %2939 = vmatpush3.bf16.msra.mxu0 %v1189_v0 }
 0x674   :  { %2950 = vmatprep.subr.bf16.mxu0 %v3408_v2 }
 0x675   :  { %v1096_v6 = vpop.xlane.xlu0 %1095  ;;  %v1233_v18 = vpop.permute.xlu1 %1232 }
 0x676   :  { %v1100_v7 = vsub.f32 %v1079_v47, %v1096_v6  ;;  %v1238_v20 = vsel %vm691_vm3, %v1233_v18, 0 }
 0x678   :  { %v1107_v8 = vmul.f32 1.442695, %v1100_v7 }
 0x679   :  { %v1282_v21 = vpop.permute.xlu1 %1281 }
 0x67a   :  { %3153 = vpow2.f32 %v1107_v8  ;;  %v1287_v37 = vsel %vm691_vm3, %v1282_v21, 0 }
 0x67c   :  { %v3150_v1 = vpop.eup %3149 }
 0x67d   :  { %v3152_v3 = vpop.eup %3151  ;;  %v1112_v4 = vsel %vm455_vm2, %v3150_v1, 0.0 }
 0x67e   :  { %1113 = vadd.xlane.f32.xlu1 %v1112_v4  ;;  %v1115_v5 = vsel %vm455_vm2, %v3152_v3, 0.0 }
 0x681   :  { %1116 = vadd.xlane.f32.xlu0 %v1115_v5 }
 0x684   :  { %v3154_v9 = vpop.eup %3153 }
 0x685   :  { %v1118_v10 = vsel %vm455_vm2, %v3154_v9, 0.0 }
 0x68f   :  { %1394 = vrot.lane.b32.xlu1 %v3647_v17, %s3411_s5 }
 0x697   :  { %1344 = vrot.lane.b32.xlu0 %v3645_v13, %s3411_s5 }
 0x69b   :  { %1342 = vrot.lane.b32.xlu0 %v3661_v31, %s3411_s5 }
 0x69f   :  { %1444 = vrot.lane.b32.xlu0 %v3656_v27, %s3411_s5 }
 0x6a3   :  { %1442 = vrot.lane.b32.xlu0 %v3683_v41, %s3411_s5 }
 0x6b3   :  { %1119 = vadd.xlane.f32.xlu1 %v1118_v10 }
 0x6c4   :  { %1392 = vrot.lane.b32.xlu1 %v3665_v33, %s3411_s5 }
 0x6c8   :  { %1494 = vrot.lane.b32.xlu1 %v3663_v32, %s3411_s5 }
 0x6cc   :  { %1492 = vrot.lane.b32.xlu1 %v3687_v43, %s3411_s5 }
 0x6d9   :  { %v1111_v11 = vpop.xlane.xlu0 %1110 }
 0x6da   :  { %3155 = vrcp.f32 %v1111_v11 }
 0x6dd   :  { %v1135_v12 = vpop.permute.xlu0 %1134 }
 0x6de   :  { %v1140_v14 = vsel %vm691_vm3, %v1135_v12, 0 }
 0x6df   :  { %2933 = vmatpush3.bf16.msra.mxu1 %v1140_v14 }
 0x6e0   :  { %2944 = vmatprep.subr.bf16.mxu1 %v3408_v2 }
 0x6e4   :  { %v3156_v15 = vpop.eup %3155 }
 0x6e5   :  { %v1125_v16 = vmul.f32 %v3156_v15, %v3148_v55 }
 0x6e7   :  { %v1129_v19 = vpack.c.bf16 %v1125_v16, %v1125_v16 }
 0x6e9   :  { %2935 = vmatmul.mubr.msk.bf16.vlgmr.msra.gmra.mrb[24].mxu1 %vm455_vm2, %v1129_v19 }
 0x6ea   :  { %2945 = vmatpush3.bf16.msra.mxu1 %v1238_v20  ;;  %2946 = vmatprep.mubr.msk.bf16.mxu1 %vm3409_vm1, %v3408_v2 }
 0x6eb   :  { %2956 = vmatprep.subr.bf16.mxu1 %v3408_v2 }
 0x70b   :  { %v1114_v22 = vpop.xlane.xlu1 %1113 }
 0x70c   :  { %3157 = vrcp.f32 %v1114_v22 }
 0x70e   :  { %v1117_v23 = vpop.xlane.xlu0 %1116 }
 0x70f   :  { %3159 = vrcp.f32 %v1117_v23  ;;  %v1395_v47 = vpop.permute.xlu1 %1394 }
 0x710   :  { %v1400_v53 = vsel %vm455_vm2, %v1395_v47, 0 }
 0x712   :  { %v1345_v28 = vpop.permute.xlu0 %1344 }
 0x713   :  { %v1350_v45 = vsel %vm455_vm2, %v1345_v28, 0 }
 0x716   :  { %v3158_v25 = vpop.eup %3157  ;;  %v1343_v44 = vpop.permute.xlu0 %1342 }
 0x717   :  { %v1126_v26 = vmul.f32 %v3158_v25, %v3150_v1 }
 0x719   :  { %v3160_v30 = vpop.eup %3159  ;;  %v1130_v34 = vpack.c.bf16 %v1126_v26, %v1126_v26 }
 0x71a   :  { %v1127_v36 = vmul.f32 %v3160_v30, %v3152_v3  ;;  %v1445_v46 = vpop.permute.xlu0 %1444 }
 0x71b   :  { %2941 = vmatmul.mubr.msk.bf16.vlgmr.msra.gmra.mrb[36].mxu0 %vm455_vm2, %v1130_v34  ;;  %v1450_v24 = vsel %vm455_vm2, %v1445_v46, 0 }
 0x71c   :  { %2951 = vmatpush3.bf16.msra.mxu0 %v1287_v37  ;;  %v1131_v39 = vpack.c.bf16 %v1127_v36, %v1127_v36  ;;  %2952 = vmatprep.mubr.msk.bf16.mxu0 %vm3409_vm1, %v3408_v2 }
 0x71d   :  { %2962 = vmatprep.subr.bf16.mxu0 %v3408_v2 }
 0x71e   :  { %2947 = vmatmul.mubr.msk.bf16.vlgmr.msra.gmra.mrb[28].mxu1 %vm455_vm2, %v1131_v39  ;;  %v1443_v29 = vpop.permute.xlu0 %1442 }
 0x71f   :  { %2957 = vmatpush3.bf16.xpose.msra.mxu1 %v1350_v45  ;;  %2958 = vmatprep.mubr.msk.bf16.mxu1 %vm3409_vm1, %v3408_v2 }
 0x720   :  { %2968 = vmatprep.subr.bf16.mxu1 %v3408_v2 }
 0x726   :  { %2959 = vmatmul.mubr.msk.bf16.vlgmr.msra.gmra.mrb[32].mxu1 %vm455_vm2, %v1343_v44 }
 0x727   :  { %2969 = vmatpush3.bf16.xpose.msra.mxu1 %v1450_v24  ;;  %2970 = vmatprep.mubr.msk.bf16.mxu1 %vm3409_vm1, %v3408_v2 }
 0x728   :  { %2980 = vmatprep.subr.bf16.mxu1 %v3408_v2 }
 0x72e   :  { %2971 = vmatmul.mubr.msk.bf16.vlgmr.msra.gmra.mrb[36].mxu1 %vm455_vm2, %v1443_v29 }
 0x72f   :  { %2982 = vmatprep.mubr.msk.bf16.mxu1 %vm3409_vm1, %v3408_v2 }
 0x740   :  { %v1120_v48 = vpop.xlane.xlu1 %1119 }
 0x741   :  { %3161 = vrcp.f32 %v1120_v48 }
 0x744   :  { %v1393_v52 = vpop.permute.xlu1 %1392 }
 0x748   :  { %v1495_v54 = vpop.permute.xlu1 %1494 }
 0x749   :  { %v1500_v55 = vsel %vm455_vm2, %v1495_v54, 0 }
 0x74b   :  { %v3162_v49 = vpop.eup %3161 }
 0x74c   :  { %v1128_v50 = vmul.f32 %v3162_v49, %v3154_v9  ;;  %v1493_v56 = vpop.permute.xlu1 %1492 }
 0x74e   :  { %v1132_v51 = vpack.c.bf16 %v1128_v50, %v1128_v50 }
 0x750   :  { %2953 = vmatmul.mubr.msk.bf16.vlgmr.msra.gmra.mrb[40].mxu0 %vm455_vm2, %v1132_v51 }
 0x751   :  { %2963 = vmatpush3.bf16.xpose.msra.mxu0 %v1400_v53  ;;  %2964 = vmatprep.mubr.msk.bf16.mxu0 %vm3409_vm1, %v3408_v2 }
 0x752   :  { %2974 = vmatprep.subr.bf16.mxu0 %v3408_v2 }
 0x758   :  { %2965 = vmatmul.mubr.msk.bf16.vlgmr.msra.gmra.mrb[44].mxu0 %vm455_vm2, %v1393_v52 }
 0x759   :  { %2975 = vmatpush3.bf16.xpose.msra.mxu0 %v1500_v55  ;;  %2976 = vmatprep.mubr.msk.bf16.mxu0 %vm3409_vm1, %v3408_v2 }
 0x75a   :  { %2986 = vmatprep.subr.bf16.mxu0 %v3408_v2 }
 0x760   :  { %2977 = vmatmul.mubr.msk.bf16.vlgmr.msra.gmra.mrb[48].mxu0 %vm455_vm2, %v1493_v56 }
 0x761   :  { %2988 = vmatprep.mubr.msk.bf16.mxu0 %vm3409_vm1, %v3408_v2 }
 0x7bc   :  { %v3847_v57 = vpop.f32.mrb[24].mxu1 }
 0x7bd   :  { %v2936_v58 = vpop.f32.mrb[25].mxu1 }
 0x7be   :  { %v1179_v59 = vpop.f32.mrb[26].mxu1 }
 0x7bf   :  { %v2937_v60 = vpop.f32.mrb[27].mxu1 }
 0x7ee   :  { %v3849_v61 = vpop.f32.mrb[36].mxu0 }
 0x7ef   :  { %v1329_v62 = vpack.c.bf16 %v3849_v61, %v3847_v57  ;;  %v2942_v63 = vpop.f32.mrb[37].mxu0 }
 0x7f0   :  { %v1228_v0 = vpop.f32.mrb[38].mxu0 }
 0x7f1   :  { %v3853_v1 = vpop.f32.mrb[28].mxu1  ;;  %v2943_v3 = vpop.f32.mrb[39].mxu0 }
 0x7f2   :  { %v2948_v4 = vpop.f32.mrb[29].mxu1 }
 0x7f3   :  { %v1277_v5 = vpop.f32.mrb[30].mxu1 }
 0x7f4   :  { %v2949_v6 = vpop.f32.mrb[31].mxu1 }
 0x7f9   :  { %v1386_v7 = vpop.f32.mrb[32].mxu1 }
 0x7fa   :  { %v2960_v8 = vpop.f32.mrb[33].mxu1  ;;  %v1542_v9 = vsel %vm455_vm2, %v1386_v7, -inf }
 0x7fb   :  { %1543 = vmax.xlane.f32.xlu0 %v1542_v9  ;;  %v1389_v10 = vpop.f32.mrb[34].mxu1 }
 0x7fc   :  { %v2961_v11 = vpop.f32.mrb[35].mxu1 }
 0x801   :  { %v1486_v12 = vpop.f32.mrb[36].mxu1 }
 0x802   :  { %v2972_v14 = vpop.f32.mrb[37].mxu1  ;;  %v1548_v15 = vsel %vm455_vm2, %v1486_v12, -inf }
 0x803   :  { %1549 = vmax.xlane.f32.xlu0 %v1548_v15  ;;  %v1489_v16 = vpop.f32.mrb[38].mxu1 }
 0x804   :  { %v2973_v18 = vpop.f32.mrb[39].mxu1 }
 0x823   :  { %v3857_v19 = vpop.f32.mrb[40].mxu0 }
 0x824   :  { %v1330_v20 = vpack.c.bf16 %v3857_v19, %v3853_v1  ;;  %v2954_v21 = vpop.f32.mrb[41].mxu0 }
 0x825   :  { %v1326_v22 = vpop.f32.mrb[42].mxu0 }
 0x826   :  { %v2955_v23 = vpop.f32.mrb[43].mxu0 }
 0x82b   :  { %v1436_v25 = vpop.f32.mrb[44].mxu0 }
 0x82c   :  { %v2966_v26 = vpop.f32.mrb[45].mxu0  ;;  %v1545_v28 = vsel %vm455_vm2, %v1436_v25, -inf }
 0x82d   :  { %1546 = vmax.xlane.f32.xlu1 %v1545_v28  ;;  %v1439_v30 = vpop.f32.mrb[46].mxu0 }
 0x82e   :  { %v2967_v34 = vpop.f32.mrb[47].mxu0 }
 0x833   :  { %v1536_v36 = vpop.f32.mrb[48].mxu0 }
 0x834   :  { %v2978_v37 = vpop.f32.mrb[49].mxu0  ;;  %v1551_v39 = vsel %vm455_vm2, %v1536_v36, -inf }
 0x835   :  { %v1539_v44 = vpop.f32.mrb[50].mxu0  ;;  %1552 = vmax.xlane.f32.xlu0 %v1551_v39 }
 0x836   :  { %v2979_v45 = vpop.f32.mrb[51].mxu0 }
 0x83e   :  { %1638 = vrot.lane.b32.xlu1 %v3685_v42, %s3411_s5 }
 0x842   :  { %1686 = vrot.lane.b32.xlu1 %v3729_v35, %s3411_s5 }
 0x846   :  { %1734 = vrot.lane.b32.xlu1 %v3733_v38, %s3411_s5 }
 0x888   :  { %v1544_v46 = vpop.xlane.xlu0 %1543 }
 0x889   :  { %v1554_v24 = vsub.f32 %v1386_v7, %v1544_v46 }
 0x88b   :  { %v1558_v29 = vmul.f32 1.442695, %v1554_v24 }
 0x88d   :  { %3163 = vpow2.f32 %v1558_v29 }
 0x890   :  { %v1550_v49 = vpop.xlane.xlu0 %1549 }
 0x891   :  { %v1556_v50 = vsub.f32 %v1486_v12, %v1550_v49 }
 0x893   :  { %v1562_v53 = vmul.f32 1.442695, %v1556_v50 }
 0x897   :  { %v3164_v47 = vpop.eup %3163 }
 0x898   :  { %v1566_v48 = vsel %vm455_vm2, %v3164_v47, 0.0 }
 0x899   :  { %1567 = vadd.xlane.f32.xlu0 %v1566_v48 }
 0x8af   :  { %1590 = vrot.lane.b32.xlu0 %v3680_v40, %s3411_s5 }
 0x8ba   :  { %v1547_v51 = vpop.xlane.xlu1 %1546 }
 0x8bb   :  { %v1555_v52 = vsub.f32 %v1436_v25, %v1547_v51 }
 0x8bd   :  { %v1560_v54 = vmul.f32 1.442695, %v1555_v52 }
 0x8be   :  { %v1639_v55 = vpop.permute.xlu1 %1638 }
 0x8bf   :  { %3165 = vpow2.f32 %v1560_v54  ;;  %v1644_v56 = vsel %vm691_vm3, %v1639_v55, 0 }
 0x8c0   :  { %3167 = vpow2.f32 %v1562_v53  ;;  %2987 = vmatpush3.bf16.msra.mxu0 %v1644_v56 }
 0x8c1   :  { %2998 = vmatprep.subr.bf16.mxu0 %v3408_v2 }
 0x8c2   :  { %v1553_v0 = vpop.xlane.xlu0 %1552  ;;  %v1687_v7 = vpop.permute.xlu1 %1686 }
 0x8c3   :  { %v1557_v3 = vsub.f32 %v1536_v36, %v1553_v0 }
 0x8c5   :  { %v1564_v4 = vmul.f32 1.442695, %v1557_v3 }
 0x8c7   :  { %3169 = vpow2.f32 %v1564_v4 }
 0x8c9   :  { %v3166_v58 = vpop.eup %3165 }
 0x8ca   :  { %v3168_v59 = vpop.eup %3167  ;;  %v1569_v60 = vsel %vm455_vm2, %v3166_v58, 0.0 }
 0x8cb   :  { %1570 = vadd.xlane.f32.xlu1 %v1569_v60  ;;  %v1572_v63 = vsel %vm455_vm2, %v3168_v59, 0.0 }
 0x8ce   :  { %1573 = vadd.xlane.f32.xlu0 %v1572_v63 }
 0x8d1   :  { %v3170_v5 = vpop.eup %3169 }
 0x8d2   :  { %v1575_v6 = vsel %vm455_vm2, %v3170_v5, 0.0 }
 0x8dc   :  { %1847 = vrot.lane.b32.xlu1 %v3647_v17, %s3412_s30 }
 0x8e4   :  { %1797 = vrot.lane.b32.xlu0 %v3645_v13, %s3412_s30 }
 0x8e8   :  { %1795 = vrot.lane.b32.xlu0 %v3661_v31, %s3412_s30 }
 0x8ec   :  { %1897 = vrot.lane.b32.xlu0 %v3656_v27, %s3412_s30 }
 0x8f0   :  { %1895 = vrot.lane.b32.xlu0 %v3683_v41, %s3412_s30 }
 0x900   :  { %1576 = vadd.xlane.f32.xlu1 %v1575_v6 }
 0x911   :  { %1845 = vrot.lane.b32.xlu1 %v3665_v33, %s3412_s30  ;;  %v1692_v33 = vsel %vm691_vm3, %v1687_v7, 0 }
 0x915   :  { %1947 = vrot.lane.b32.xlu1 %v3663_v32, %s3412_s30  ;;  %v1735_v32 = vpop.permute.xlu1 %1734 }
 0x916   :  { %v1740_v18 = vsel %vm691_vm3, %v1735_v32, 0 }
 0x919   :  { %1945 = vrot.lane.b32.xlu1 %v3687_v43, %s3412_s30 }
 0x926   :  { %v1568_v13 = vpop.xlane.xlu0 %1567 }
 0x927   :  { %3171 = vrcp.f32 %v1568_v13 }
 0x92a   :  { %v1591_v17 = vpop.permute.xlu0 %1590 }
 0x92b   :  { %v1596_v27 = vsel %vm691_vm3, %v1591_v17, 0 }
 0x92c   :  { %2981 = vmatpush3.bf16.msra.mxu1 %v1596_v27 }
 0x92d   :  { %2992 = vmatprep.subr.bf16.mxu1 %v3408_v2 }
 0x931   :  { %v3172_v31 = vpop.eup %3171 }
 0x932   :  { %v1582_v41 = vmul.f32 %v3172_v31, %v3164_v47 }
 0x934   :  { %v1586_v8 = vpack.c.bf16 %v1582_v41, %v1582_v41 }
 0x936   :  { %2983 = vmatmul.mubr.msk.bf16.vlgmr.msra.gmra.mrb[40].mxu1 %vm455_vm2, %v1586_v8 }
 0x937   :  { %2993 = vmatpush3.bf16.msra.mxu1 %v1692_v33  ;;  %2994 = vmatprep.mubr.msk.bf16.mxu1 %vm3409_vm1, %v3408_v2 }
 0x938   :  { %3004 = vmatprep.subr.bf16.mxu1 %v3408_v2 }
 0x958   :  { %v1571_v43 = vpop.xlane.xlu1 %1570 }
 0x959   :  { %3173 = vrcp.f32 %v1571_v43 }
 0x95b   :  { %v1574_v9 = vpop.xlane.xlu0 %1573 }
 0x95c   :  { %3175 = vrcp.f32 %v1574_v9  ;;  %v1848_v30 = vpop.permute.xlu1 %1847 }
 0x95d   :  { %v1853_v45 = vsel %vm455_vm2, %v1848_v30, 0 }
 0x95f   :  { %v1798_v12 = vpop.permute.xlu0 %1797 }
 0x960   :  { %v1803_v23 = vsel %vm455_vm2, %v1798_v12, 0 }
 0x963   :  { %v3174_v10 = vpop.eup %3173  ;;  %v1796_v22 = vpop.permute.xlu0 %1795 }
 0x964   :  { %v1583_v11 = vmul.f32 %v3174_v10, %v3166_v58 }
 0x966   :  { %v3176_v14 = vpop.eup %3175  ;;  %v1587_v15 = vpack.c.bf16 %v1583_v11, %v1583_v11 }
 0x967   :  { %v1584_v16 = vmul.f32 %v3176_v14, %v3168_v59  ;;  %v1898_v25 = vpop.permute.xlu0 %1897 }
 0x968   :  { %2989 = vmatmul.mubr.msk.bf16.vlgmr.msra.gmra.mrb[52].mxu0 %vm455_vm2, %v1587_v15  ;;  %v1903_v26 = vsel %vm455_vm2, %v1898_v25, 0 }
 0x969   :  { %2999 = vmatpush3.bf16.msra.mxu0 %v1740_v18  ;;  %v1588_v21 = vpack.c.bf16 %v1584_v16, %v1584_v16  ;;  %3000 = vmatprep.mubr.msk.bf16.mxu0 %vm3409_vm1, %v3408_v2 }
 0x96a   :  { %3010 = vmatprep.subr.bf16.mxu0 %v3408_v2 }
 0x96b   :  { %2995 = vmatmul.mubr.msk.bf16.vlgmr.msra.gmra.mrb[44].mxu1 %vm455_vm2, %v1588_v21  ;;  %v1896_v28 = vpop.permute.xlu0 %1895 }
 0x96c   :  { %3005 = vmatpush3.bf16.xpose.msra.mxu1 %v1803_v23  ;;  %3006 = vmatprep.mubr.msk.bf16.mxu1 %vm3409_vm1, %v3408_v2 }
 0x96d   :  { %3016 = vmatprep.subr.bf16.mxu1 %v3408_v2 }
 0x973   :  { %3007 = vmatmul.mubr.msk.bf16.vlgmr.msra.gmra.mrb[48].mxu1 %vm455_vm2, %v1796_v22 }
 0x974   :  { %3017 = vmatpush3.bf16.xpose.msra.mxu1 %v1903_v26  ;;  %3018 = vmatprep.mubr.msk.bf16.mxu1 %vm3409_vm1, %v3408_v2 }
 0x975   :  { %3028 = vmatprep.subr.bf16.mxu1 %v3408_v2 }
 0x97b   :  { %3019 = vmatmul.mubr.msk.bf16.vlgmr.msra.gmra.mrb[52].mxu1 %vm455_vm2, %v1896_v28 }
 0x97c   :  { %3030 = vmatprep.mubr.msk.bf16.mxu1 %vm3409_vm1, %v3408_v2 }
 0x98d   :  { %v1577_v34 = vpop.xlane.xlu1 %1576 }
 0x98e   :  { %3177 = vrcp.f32 %v1577_v34 }
 0x991   :  { %v1846_v44 = vpop.permute.xlu1 %1845 }
 0x995   :  { %v1948_v46 = vpop.permute.xlu1 %1947 }
 0x996   :  { %v1953_v24 = vsel %vm455_vm2, %v1948_v46, 0 }
 0x998   :  { %v3178_v36 = vpop.eup %3177 }
 0x999   :  { %v1585_v37 = vmul.f32 %v3178_v36, %v3170_v5  ;;  %v1946_v29 = vpop.permute.xlu1 %1945 }
 0x99b   :  { %v1589_v39 = vpack.c.bf16 %v1585_v37, %v1585_v37 }
 0x99d   :  { %3001 = vmatmul.mubr.msk.bf16.vlgmr.msra.gmra.mrb[56].mxu0 %vm455_vm2, %v1589_v39 }
 0x99e   :  { %3011 = vmatpush3.bf16.xpose.msra.mxu0 %v1853_v45  ;;  %3012 = vmatprep.mubr.msk.bf16.mxu0 %vm3409_vm1, %v3408_v2 }
 0x99f   :  { %3022 = vmatprep.subr.bf16.mxu0 %v3408_v2 }
 0x9a5   :  { %3013 = vmatmul.mubr.msk.bf16.vlgmr.msra.gmra.mrb[60].mxu0 %vm455_vm2, %v1846_v44 }
 0x9a6   :  { %3023 = vmatpush3.bf16.xpose.msra.mxu0 %v1953_v24  ;;  %3024 = vmatprep.mubr.msk.bf16.mxu0 %vm3409_vm1, %v3408_v2 }
 0x9a7   :  { %3034 = vmatprep.subr.bf16.mxu0 %v3408_v2 }
 0x9ad   :  { %3025 = vmatmul.mubr.msk.bf16.vlgmr.msra.gmra.mrb[64].mxu0 %vm455_vm2, %v1946_v29 }
 0x9ae   :  { %3036 = vmatprep.mubr.msk.bf16.mxu0 %vm3409_vm1, %v3408_v2 }
 0xa09   :  { %v3931_v47 = vpop.f32.mrb[40].mxu1 }
 0xa0a   :  { %v2984_v48 = vpop.f32.mrb[41].mxu1 }
 0xa0b   :  { %v1635_v49 = vpop.f32.mrb[42].mxu1 }
 0xa0c   :  { %v2985_v50 = vpop.f32.mrb[43].mxu1 }
 0xa3b   :  { %v1680_v51 = vpop.f32.mrb[52].mxu0 }
 0xa3c   :  { %v1782_v52 = vpack.c.bf16 %v1680_v51, %v3931_v47  ;;  %v2990_v53 = vpop.f32.mrb[53].mxu0 }
 0xa3d   :  { %v1683_v54 = vpop.f32.mrb[54].mxu0 }
 0xa3e   :  { %v3934_v55 = vpop.f32.mrb[44].mxu1  ;;  %v2991_v56 = vpop.f32.mrb[55].mxu0 }
 0xa3f   :  { %v2996_v58 = vpop.f32.mrb[45].mxu1 }
 0xa40   :  { %v1731_v59 = vpop.f32.mrb[46].mxu1 }
 0xa41   :  { %v2997_v60 = vpop.f32.mrb[47].mxu1 }
 0xa46   :  { %v1839_v63 = vpop.f32.mrb[48].mxu1 }
 0xa47   :  { %v3008_v0 = vpop.f32.mrb[49].mxu1  ;;  %v1995_v3 = vsel %vm455_vm2, %v1839_v63, -inf }
 0xa48   :  { %1996 = vmax.xlane.f32.xlu0 %v1995_v3  ;;  %v1842_v4 = vpop.f32.mrb[50].mxu1 }
 0xa49   :  { %v3009_v5 = vpop.f32.mrb[51].mxu1 }
 0xa4e   :  { %v1939_v6 = vpop.f32.mrb[52].mxu1 }
 0xa4f   :  { %v3020_v13 = vpop.f32.mrb[53].mxu1  ;;  %v2001_v17 = vsel %vm455_vm2, %v1939_v6, -inf }
 0xa50   :  { %2002 = vmax.xlane.f32.xlu0 %v2001_v17  ;;  %v1942_v27 = vpop.f32.mrb[54].mxu1 }
 0xa51   :  { %v3021_v31 = vpop.f32.mrb[55].mxu1 }
 0xa70   :  { %v1776_v41 = vpop.f32.mrb[56].mxu0 }
 0xa71   :  { %v1783_v7 = vpack.c.bf16 %v1776_v41, %v3934_v55  ;;  %v3002_v8 = vpop.f32.mrb[57].mxu0 }
 0xa72   :  { %v1779_v33 = vpop.f32.mrb[58].mxu0 }
 0xa73   :  { %v3003_v32 = vpop.f32.mrb[59].mxu0 }
 0xa78   :  { %v1889_v43 = vpop.f32.mrb[60].mxu0 }
 0xa79   :  { %v3014_v9 = vpop.f32.mrb[61].mxu0  ;;  %v1998_v10 = vsel %vm455_vm2, %v1889_v43, -inf }
 0xa7a   :  { %1999 = vmax.xlane.f32.xlu1 %v1998_v10  ;;  %v1892_v11 = vpop.f32.mrb[62].mxu0 }
 0xa7b   :  { %v3015_v12 = vpop.f32.mrb[63].mxu0 }
 0xa80   :  { %v1989_v14 = vpop.f32.mrb[64].mxu0 }
 0xa81   :  { %v3026_v15 = vpop.f32.mrb[65].mxu0  ;;  %v2004_v16 = vsel %vm455_vm2, %v1989_v14, -inf }
 0xa82   :  { %v1992_v18 = vpop.f32.mrb[66].mxu0  ;;  %2005 = vmax.xlane.f32.xlu0 %v2004_v16  ;;  %v3111_v16 = vld [vmem:[%s4091_s9] sm:$0xff]  }
 0xa83   :  { %v3027_v21 = vpop.f32.mrb[67].mxu0  ;;  %v3112_v18 = vld [vmem:[%s4091_s9 + $0x8] sm:$0xff]  }
 0xad5   :  { %v1997_v22 = vpop.xlane.xlu0 %1996 }
 0xad6   :  { %v2007_v23 = vsub.f32 %v1839_v63, %v1997_v22 }
 0xad8   :  { %v2011_v25 = vmul.f32 1.442695, %v2007_v23 }
 0xada   :  { %3179 = vpow2.f32 %v2011_v25 }
 0xadd   :  { %v2003_v26 = vpop.xlane.xlu0 %2002 }
 0xade   :  { %v2009_v28 = vsub.f32 %v1939_v6, %v2003_v26 }
 0xae0   :  { %v2015_v30 = vmul.f32 1.442695, %v2009_v28 }
 0xae2   :  { %3181 = vpow2.f32 %v2015_v30 }
 0xae4   :  { %v3180_v34 = vpop.eup %3179 }
 0xae5   :  { %v2019_v36 = vsel %vm455_vm2, %v3180_v34, 0.0 }
 0xae6   :  { %2020 = vadd.xlane.f32.xlu0 %v2019_v36 }
 0xaec   :  { %v3182_v37 = vpop.eup %3181 }
 0xaed   :  { %v2025_v39 = vsel %vm455_vm2, %v3182_v37, 0.0 }
 0xaee   :  { %2026 = vadd.xlane.f32.xlu0 %v2025_v39 }
 0xb04   :  { %2043 = vrot.lane.b32.xlu0 %v3680_v40, %s3412_s30 }
 0xb07   :  { %v2000_v44 = vpop.xlane.xlu1 %1999 }
 0xb08   :  { %v2008_v45 = vsub.f32 %v1889_v43, %v2000_v44  ;;  %1333 = vrot.lane.b32.xlu0 %v1329_v62, %s3413_s19 }
 0xb0a   :  { %v2013_v46 = vmul.f32 1.442695, %v2008_v45 }
 0xb0c   :  { %3183 = vpow2.f32 %v2013_v46  ;;  %1786 = vrot.lane.b32.xlu0 %v1782_v52, %s3414_s1 }
 0xb0f   :  { %v2006_v40 = vpop.xlane.xlu0 %2005 }
 0xb10   :  { %v2010_v47 = vsub.f32 %v1989_v14, %v2006_v40  ;;  %v3211_v40 = vld [vmem:[%s4103_s8] sm:$0xff] }
 0xb12   :  { %v2017_v48 = vmul.f32 1.442695, %v2010_v47 }
 0xb14   :  { %3185 = vpow2.f32 %v2017_v48 }
 0xb16   :  { %v3184_v24 = vpop.eup %3183 }
 0xb17   :  { %v2022_v29 = vsel %vm455_vm2, %v3184_v24, 0.0 }
 0xb18   :  { %2023 = vadd.xlane.f32.xlu1 %v2022_v29 }
 0xb1e   :  { %v3186_v57 = vpop.eup %3185 }
 0xb1f   :  { %v2028_v61 = vsel %vm455_vm2, %v3186_v57, 0.0 }
 0xb29   :  { %2091 = vrot.lane.b32.xlu1 %v3685_v42, %s3412_s30 }
 0xb2d   :  { %2139 = vrot.lane.b32.xlu1 %v3729_v35, %s3412_s30 }
 0xb51   :  { %2029 = vadd.xlane.f32.xlu1 %v2028_v61 }
 0xb62   :  { %2187 = vrot.lane.b32.xlu1 %v3733_v38, %s3412_s30 }
 0xb66   :  { %1335 = vrot.lane.b32.xlu1 %v1330_v20, %s3413_s19 }
 0xb6a   :  { %1788 = vrot.lane.b32.xlu1 %v1783_v7, %s3414_s1 }
 0xb73   :  { %v2021_v42 = vpop.xlane.xlu0 %2020 }
 0xb74   :  { %3187 = vrcp.f32 %v2021_v42 }
 0xb7b   :  { %v2027_v35 = vpop.xlane.xlu0 %2026 }
 0xb7c   :  { %3189 = vrcp.f32 %v2027_v35  ;;  %v3213_v35 = vld [vmem:[%s4103_s8 + $0x8] sm:$0xff] }
 0xb7e   :  { %v3188_v62 = vpop.eup %3187 }
 0xb7f   :  { %v2035_v49 = vmul.f32 %v3188_v62, %v3180_v34  ;;  %v2044_v50 = vpop.permute.xlu0 %2043 }
 0xb80   :  { %v2049_v51 = vsel %vm691_vm3, %v2044_v50, 0 }
 0xb81   :  { %3029 = vmatpush3.bf16.msra.mxu1 %v2049_v51  ;;  %v2039_v52 = vpack.c.bf16 %v2035_v49, %v2035_v49  ;;  %v3214_v51 = vld [vmem:[%s4103_s8 + $0x18] sm:$0xff] }
 0xb82   :  { %3040 = vmatprep.subr.bf16.mxu1 %v3408_v2 }
 0xb83   :  { %v1334_v38 = vpop.permute.xlu0 %1333 }
 0xb84   :  { %1340 = vst.msk [vmem:[#allocation2] sm:$0xff] %vm1339_vm4, %v1334_v38  ;;  %3031 = vmatmul.mubr.msk.bf16.vlgmr.msra.gmra.mrb[56].mxu1 %vm455_vm2, %v2039_v52 }
 0xb85   :  { %3042 = vmatprep.mubr.msk.bf16.mxu1 %vm3409_vm1, %v3408_v2 }
 0xb86   :  { %v3190_v20 = vpop.eup %3189 }
 0xb87   :  { %v1787_v1 = vpop.permute.xlu0 %1786  ;;  %v2037_v55 = vmul.f32 %v3190_v20, %v3182_v37  ;;  %v2721_v37 = vld [vmem:[#allocation11] ss:$0 sm:$0xff] }
 0xb88   :  { %1793 = vst.msk [vmem:[#allocation2] sm:$0xff] %vm1792_vm5, %v1787_v1 }
 0xb89   :  { %v2041_v60 = vpack.c.bf16 %v2037_v55, %v2037_v55 }
 0xba5   :  { %v2024_v19 = vpop.xlane.xlu1 %2023 }
 0xba6   :  { %3191 = vrcp.f32 %v2024_v19 }
 0xba9   :  { %v2092_v53 = vpop.permute.xlu1 %2091 }
 0xbaa   :  { %v2097_v54 = vsel %vm691_vm3, %v2092_v53, 0 }
 0xbab   :  { %3035 = vmatpush3.bf16.msra.mxu0 %v2097_v54 }
 0xbac   :  { %3046 = vmatprep.subr.bf16.mxu0 %v3408_v2 }
 0xbad   :  { %v2140_v56 = vpop.permute.xlu1 %2139 }
 0xbae   :  { %v2145_v58 = vsel %vm691_vm3, %v2140_v56, 0 }
 0xbaf   :  { %3041 = vmatpush3.bf16.msra.mxu1 %v2145_v58 }
 0xbb0   :  { %v3192_v59 = vpop.eup %3191  ;;  %3052 = vmatprep.subr.bf16.mxu1 %v3111_v16 }
 0xbb1   :  { %v2036_v63 = vmul.f32 %v3192_v59, %v3184_v24 }
 0xbb2   :  { %3043 = vmatmul.mubr.msk.bf16.vlgmr.msra.gmra.mrb[60].mxu1 %vm455_vm2, %v2041_v60 }
 0xbb3   :  { %v2040_v0 = vpack.c.bf16 %v2036_v63, %v2036_v63  ;;  %3053 = vmatpush3.bf16.msra.mxu1 %v3111_v16 }
 0xbb4   :  { %3054 = vmatprep.subr.bf16.mxu1 %v3112_v18 }
 0xbb5   :  { %3037 = vmatmul.mubr.msk.bf16.vlgmr.msra.gmra.mrb[68].mxu0 %vm455_vm2, %v2040_v0 }
 0xbb6   :  { %3048 = vmatprep.mubr.msk.bf16.mxu0 %vm3409_vm1, %v3408_v2 }
 0xbb7   :  { %3055 = vmatpush3.bf16.msra.mxu1 %v3112_v18 }
 0xbde   :  { %v2030_v3 = vpop.xlane.xlu1 %2029 }
 0xbdf   :  { %3193 = vrcp.f32 %v2030_v3 }
 0xbe2   :  { %v2188_v4 = vpop.permute.xlu1 %2187 }
 0xbe3   :  { %v2193_v5 = vsel %vm691_vm3, %v2188_v4, 0 }
 0xbe4   :  { %3047 = vmatpush3.bf16.msra.mxu0 %v2193_v5 }
 0xbe6   :  { %v1336_v6 = vpop.permute.xlu1 %1335 }
 0xbe7   :  { %1341 = vst.msk [vmem:[#allocation2 + $0x8] sm:$0xff] %vm1339_vm4, %v1336_v6 }
 0xbe9   :  { %v3194_v13 = vpop.eup %3193 }
 0xbea   :  { %v2038_v17 = vmul.f32 %v3194_v13, %v3186_v57  ;;  %v1789_v27 = vpop.permute.xlu1 %1788  ;;  %v3212_v57 = vld [vmem:[%s4103_s8 + $0x10] sm:$0xff] }
 0xbeb   :  { %1794 = vst.msk [vmem:[#allocation2 + $0x8] sm:$0xff] %vm1792_vm5, %v1789_v27 }
 0xbec   :  { %v2042_v31 = vpack.c.bf16 %v2038_v17, %v2038_v17 }
 0xbee   :  { %3049 = vmatmul.mubr.msk.bf16.vlgmr.msra.gmra.mrb[72].mxu0 %vm455_vm2, %v2042_v31 }
 0xc57   :  { %v2085_v41 = vpop.f32.mrb[56].mxu1 }
 0xc58   :  { %v3032_v7 = vpop.f32.mrb[57].mxu1 }
 0xc59   :  { %v2088_v2 = vpop.f32.mrb[58].mxu1  ;;  %v3113_v7 = vld [vmem:[%s4095_s13] sm:$0xff]  }
 0xc5a   :  { %v3033_v8 = vpop.f32.mrb[59].mxu1  ;;  %3060 = vmatprep.subr.bf16.mxu0 %v3113_v7  ;;  %v3114_v2 = vld [vmem:[%s4095_s13 + $0x8] sm:$0xff]  }
 0xc5b   :  { %3061 = vmatpush3.bf16.msra.mxu0 %v3113_v7 }
 0xc5c   :  { %3062 = vmatprep.subr.bf16.mxu0 %v3114_v2 }
 0xc5f   :  { %3063 = vmatpush3.bf16.msra.mxu0 %v3114_v2 }
 0xc85   :  { %v2181_v33 = vpop.f32.mrb[60].mxu1 }
 0xc86   :  { %v3044_v32 = vpop.f32.mrb[61].mxu1 }
 0xc87   :  { %v2184_v43 = vpop.f32.mrb[62].mxu1 }
 0xc88   :  { %v2133_v9 = vpop.f32.mrb[68].mxu0  ;;  %v3045_v10 = vpop.f32.mrb[63].mxu1 }
 0xc89   :  { %v2235_v11 = vpack.c.bf16 %v2133_v9, %v2085_v41  ;;  %v3038_v12 = vpop.f32.mrb[69].mxu0 }
 0xc8a   :  { %v2136_v14 = vpop.f32.mrb[70].mxu0 }
 0xc8b   :  { %v3039_v15 = vpop.f32.mrb[71].mxu0  ;;  %2239 = vrot.lane.b32.xlu0 %v2235_v11, %s3415_s6 }
 0xcc1   :  { %v2229_v21 = vpop.f32.mrb[72].mxu0 }
 0xcc2   :  { %v2236_v22 = vpack.c.bf16 %v2229_v21, %v2181_v33  ;;  %v3050_v23 = vpop.f32.mrb[73].mxu0 }
 0xcc3   :  { %v2232_v25 = vpop.f32.mrb[74].mxu0 }
 0xcc4   :  { %v3051_v26 = vpop.f32.mrb[75].mxu0  ;;  %2241 = vrot.lane.b32.xlu1 %v2236_v22, %s3415_s6  ;;  %v2726_v22 = vld [vmem:[#allocation12] ss:$0 sm:$0xff] }
 0xcfd   :  { %v2240_v28 = vpop.permute.xlu0 %2239 }
 0xcfe   :  { %2246 = vst.msk [vmem:[#allocation2] sm:$0xff] %vm2245_vm6, %v2240_v28 }
 0xd05   :  { %v2248_v30 = vld [vmem:[#allocation2] sm:$0xff] }
 0xd06   :  { %3056 = vmatprep.mubr.msk.bf16.mxu1 %vm145_vm0, %v2248_v30 }
 0xd36   :  { %v2242_v34 = vpop.permute.xlu1 %2241 }
 0xd37   :  { %2247 = vst.msk [vmem:[#allocation2 + $0x8] sm:$0xff] %vm2245_vm6, %v2242_v34  ;;  %v2727_v34 = vld [vmem:[#allocation14] ss:$0 sm:$0xff] }
 0xd3e   :  { %v2249_v36 = vld [vmem:[#allocation2 + $0x8] sm:$0xff] }
 0xd3f   :  { %3057 = vmatmul.mubr.msk.bf16.vlgmr.msra.gmra.mrb[64].mxu1 %vm145_vm0, %v2249_v36 }
 0xe12   :  { %v3058_v39 = vpop.f32.mrb[64].mxu1 }
 0xe13   :  { %v2313_v44 = vpop.f32.mrb[65].mxu1  ;;  %v2322_v45 = vadd.f32 %v3058_v39, %v2721_v37 }
 0xe14   :  { %v2314_v46 = vadd.f32 %v2721_v37, %v2313_v44  ;;  %v3059_v24 = vpop.f32.mrb[66].mxu1 }
 0xe15   :  { %v2316_v29 = vpop.f32.mrb[67].mxu1  ;;  %v3995_v61 = vadd.f32 %v3212_v57, %v2322_v45  ;;  %v2325_v42 = vadd.f32 %v3059_v24, %v2721_v37 }
 0xe16   :  { %v3990_v47 = vadd.f32 %v3211_v40, %v2314_v46  ;;  %v2317_v48 = vadd.f32 %v2721_v37, %v2316_v29 }
 0xe17   :  { %v4009_v52 = vadd.f32 %v3214_v51, %v2325_v42  ;;  %v2340_v38 = vsel %vm145_vm0, %v3995_v61, 0.0  ;;  %v3118_v51 = vld [vmem:[%s4097_s15 + $0x18] sm:$0xff]  }
 0xe18   :  { %v4000_v62 = vadd.f32 %v3213_v35, %v2317_v48  ;;  %v2334_v49 = vsel %vm145_vm0, %v3990_v47, 0.0  ;;  %v3115_v35 = vld [vmem:[%s4097_s15] sm:$0xff]  }
 0xe19   :  { %2335 = vadd.xlane.f32.xlu0 %v2334_v49  ;;  %v2343_v1 = vsel %vm145_vm0, %v4009_v52, 0.0  ;;  %3068 = vmatprep.subr.bf16.mxu1 %v3115_v35  ;;  %v3116_v49 = vld [vmem:[%s4097_s15 + $0x8] sm:$0xff]  }
 0xe1a   :  { %v2337_v50 = vsel %vm145_vm0, %v4000_v62, 0.0  ;;  %3069 = vmatpush3.bf16.msra.mxu1 %v3115_v35 }
 0xe1b   :  { %2338 = vadd.xlane.f32.xlu1 %v2337_v50  ;;  %3070 = vmatprep.subr.bf16.mxu1 %v3116_v49  ;;  %v3117_v50 = vld [vmem:[%s4097_s15 + $0x10] sm:$0xff]  }
 0xe1d   :  { %2341 = vadd.xlane.f32.xlu0 %v2340_v38  ;;  %v3119_v38 = vld [vmem:[%s4097_s15 + $0x20] sm:$0xff]  }
 0xe1e   :  { %3071 = vmatpush3.bf16.msra.mxu1 %v3116_v49 }
 0xe1f   :  { %3072 = vmatprep.subr.bf16.mxu1 %v3117_v50 }
 0xe21   :  { %2344 = vadd.xlane.f32.xlu0 %v2343_v1  ;;  %v3120_v1 = vld [vmem:[%s4097_s15 + $0x28] sm:$0xff]  }
 0xe22   :  { %3073 = vmatpush3.bf16.msra.mxu1 %v3117_v50 }
 0xe23   :  { %3074 = vmatprep.subr.bf16.mxu1 %v3118_v51 }
 0xe26   :  { %3075 = vmatpush3.bf16.msra.mxu1 %v3118_v51 }
 0xe27   :  { %3076 = vmatprep.subr.bf16.mxu1 %v3119_v38 }
 0xe2a   :  { %3077 = vmatpush3.bf16.msra.mxu1 %v3119_v38 }
 0xe2b   :  { %3078 = vmatprep.subr.bf16.mxu1 %v3120_v1 }
 0xe2e   :  { %3079 = vmatpush3.bf16.msra.mxu1 %v3120_v1 }
 0xea6   :  { %v2336_v19 = vpop.xlane.xlu0 %2335 }
 0xea7   :  { %v2346_v20 = vmul.f32 0.03125, %v2336_v19  ;;  %v3121_v19 = vld [vmem:[%s4097_s15 + $0x30] sm:$0xff]  }
 0xea8   :  { %v2339_v53 = vpop.xlane.xlu1 %2338  ;;  %3080 = vmatprep.subr.bf16.mxu1 %v3121_v19 }
 0xea9   :  { %v2350_v54 = vsub.f32 %v3990_v47, %v2346_v20  ;;  %v2347_v55 = vmul.f32 0.03125, %v2339_v53  ;;  %v3122_v20 = vld [vmem:[%s4097_s15 + $0x38] sm:$0xff]   ;;  %3081 = vmatpush3.bf16.msra.mxu1 %v3121_v19  ;;  %v2728_v53 = vld [vmem:[%s4096_s14] ss:$0 sm:$0xff] }
 0xeaa   :  { %v2342_v56 = vpop.xlane.xlu0 %2341  ;;  %3082 = vmatprep.subr.bf16.mxu1 %v3122_v20 }
 0xeab   :  { %v2351_v58 = vsub.f32 %v4000_v62, %v2347_v55  ;;  %v2348_v59 = vmul.f32 0.03125, %v2342_v56  ;;  %v2354_v60 = vmul.f32 %v2350_v54, %v2350_v54 }
 0xead   :  { %v2352_v63 = vsub.f32 %v3995_v61, %v2348_v59  ;;  %v2358_v0 = vsel %vm145_vm0, %v2354_v60, 0.0  ;;  %v2355_v3 = vmul.f32 %v2351_v58, %v2351_v58  ;;  %3083 = vmatpush3.bf16.msra.mxu1 %v3122_v20 }
 0xeae   :  { %2359 = vadd.xlane.f32.xlu0 %v2358_v0  ;;  %v2345_v4 = vpop.xlane.xlu0 %2344 }
 0xeaf   :  { %v2349_v5 = vmul.f32 0.03125, %v2345_v4  ;;  %v2361_v6 = vsel %vm145_vm0, %v2355_v3, 0.0  ;;  %v2356_v13 = vmul.f32 %v2352_v63, %v2352_v63 }
 0xeb0   :  { %2362 = vadd.xlane.f32.xlu1 %v2361_v6 }
 0xeb1   :  { %v2353_v17 = vsub.f32 %v4009_v52, %v2349_v5  ;;  %v2364_v27 = vsel %vm145_vm0, %v2356_v13, 0.0 }
 0xeb2   :  { %2365 = vadd.xlane.f32.xlu0 %v2364_v27 }
 0xeb3   :  { %v2357_v31 = vmul.f32 %v2353_v17, %v2353_v17 }
 0xeb5   :  { %v2367_v41 = vsel %vm145_vm0, %v2357_v31, 0.0 }
 0xeb6   :  { %2368 = vadd.xlane.f32.xlu1 %v2367_v41 }
 0xf3b   :  { %v2360_v8 = vpop.xlane.xlu0 %2359 }
 0xf3c   :  { %v2370_v33 = vmul.f32 0.03125, %v2360_v8 }
 0xf3d   :  { %v2363_v32 = vpop.xlane.xlu1 %2362 }
 0xf3e   :  { %v2374_v43 = vadd.f32 1e-05, %v2370_v33  ;;  %v2371_v9 = vmul.f32 0.03125, %v2363_v32 }
 0xf3f   :  { %v2366_v10 = vpop.xlane.xlu0 %2365 }
 0xf40   :  { %3195 = vrsqrt.f32 %v2374_v43  ;;  %v2375_v11 = vadd.f32 1e-05, %v2371_v9  ;;  %v2372_v12 = vmul.f32 0.03125, %v2366_v10 }
 0xf42   :  { %3197 = vrsqrt.f32 %v2375_v11  ;;  %v2376_v14 = vadd.f32 1e-05, %v2372_v12 }
 0xf43   :  { %v2369_v15 = vpop.xlane.xlu1 %2368 }
 0xf44   :  { %3199 = vrsqrt.f32 %v2376_v14  ;;  %v2373_v16 = vmul.f32 0.03125, %v2369_v15 }
 0xf46   :  { %v2377_v18 = vadd.f32 1e-05, %v2373_v16 }
 0xf48   :  { %3201 = vrsqrt.f32 %v2377_v18 }
 0xf4a   :  { %v3196_v21 = vpop.eup %3195 }
 0xf4b   :  { %v2382_v23 = vmul.f32 %v3196_v21, %v2350_v54 }
 0xf4c   :  { %v3198_v25 = vpop.eup %3197 }
 0xf4d   :  { %v2383_v26 = vmul.f32 %v3198_v25, %v2351_v58  ;;  %v2392_v28 = vmul.f32 %v2726_v22, %v2382_v23 }
 0xf4e   :  { %v3200_v30 = vpop.eup %3199 }
 0xf4f   :  { %v2384_v36 = vmul.f32 %v3200_v30, %v2352_v63  ;;  %v2393_v37 = vmul.f32 %v2726_v22, %v2383_v26  ;;  %v2402_v39 = vadd.f32 %v2727_v34, %v2392_v28 }
 0xf51   :  { %v2403_v44 = vadd.f32 %v2727_v34, %v2393_v37  ;;  %v2394_v46 = vmul.f32 %v2726_v22, %v2384_v36 }
 0xf52   :  { %v3202_v45 = vpop.eup %3201 }
 0xf53   :  { %v2385_v24 = vmul.f32 %v3202_v45, %v2353_v17  ;;  %v2406_v29 = vpack.c.bf16 %v2403_v44, %v2402_v39  ;;  %v2404_v48 = vadd.f32 %v2727_v34, %v2394_v46 }
 0xf55   :  { %v2395_v40 = vmul.f32 %v2726_v22, %v2385_v24  ;;  %3064 = vmatprep.mubr.msk.bf16.mxu0 %vm145_vm0, %v2406_v29  ;;  %v2733_v29 = vld [vmem:[%s4098_s16] ss:$0 sm:$0xff]  ;;  %s3369_s16 = scalar_lea.vmem %s2658_s23, 512 }
 0xf56   :  { %p3370_p0 = scmp.ne.s32.totalorder %s2658_s23, %s3369_s16  ;;  %p3375_p2 = scmp.lt.s32.totalorder %s3369_s16, %s3369_s16 }
 0xf57   :  { %v2405_v57 = vadd.f32 %v2727_v34, %v2395_v40 }
 0xf58   :  { %p3376_p3 = por %p3375_p2, %p3374_p1 }
 0xf59   :  { %v2407_v42 = vpack.c.bf16 %v2405_v57, %v2404_v48 }
 0xf5a   :  { %p3377_p4 = pnand %p3376_p3, %p3370_p0 }
 0xf5b   :  { %3065 = vmatmul.mubr.msk.bf16.vlgmr.msra.gmra.mrb[76].mxu0 %vm145_vm0, %v2407_v42 }
0x102e   :  { %v3066_v54 = vpop.f32.mrb[76].mxu0 }
0x102f   :  { %v2480_v55 = vadd.f32 %v3066_v54, %v2728_v53  ;;  %v2471_v56 = vpop.f32.mrb[77].mxu0 }
0x1030   :  { %v2472_v58 = vadd.f32 %v2728_v53, %v2471_v56  ;;  %v3067_v59 = vpop.f32.mrb[78].mxu0 }
0x1031   :  { %v2492_v60 = vmul.f32 0.044715, %v2480_v55  ;;  %v2483_v63 = vadd.f32 %v3067_v59, %v2728_v53  ;;  %v2474_v0 = vpop.f32.mrb[79].mxu0  ;;  %v2488_v25 = vmul.f32 0.5, %v2480_v55 }
0x1032   :  { %v2490_v3 = vmul.f32 0.044715, %v2472_v58  ;;  %v2475_v4 = vadd.f32 %v2728_v53, %v2474_v0  ;;  %v2486_v30 = vmul.f32 0.5, %v2472_v58 }
0x1033   :  { %v2496_v5 = vmul.f32 %v2492_v60, %v2480_v55  ;;  %v2493_v6 = vmul.f32 0.044715, %v2483_v63  ;;  %v2489_v26 = vmul.f32 0.5, %v2483_v63 }
0x1034   :  { %v2494_v13 = vmul.f32 %v2490_v3, %v2472_v58  ;;  %v2491_v17 = vmul.f32 0.044715, %v2475_v4  ;;  %v2487_v34 = vmul.f32 0.5, %v2475_v4 }
0x1035   :  { %v2500_v27 = vmul.f32 %v2496_v5, %v2480_v55  ;;  %v2497_v31 = vmul.f32 %v2493_v6, %v2483_v63 }
0x1036   :  { %v2498_v41 = vmul.f32 %v2494_v13, %v2472_v58  ;;  %v2495_v7 = vmul.f32 %v2491_v17, %v2475_v4 }
0x1037   :  { %v2504_v2 = vadd.f32 %v2500_v27, %v2480_v55  ;;  %v2501_v8 = vmul.f32 %v2497_v31, %v2483_v63 }
0x1038   :  { %v2499_v33 = vmul.f32 %v2495_v7, %v2475_v4  ;;  %v2502_v32 = vadd.f32 %v2498_v41, %v2472_v58 }
0x1039   :  { %v2508_v43 = vmul.f32 0.7978845, %v2504_v2  ;;  %v2505_v9 = vadd.f32 %v2501_v8, %v2483_v63 }
0x103a   :  { %v2503_v10 = vadd.f32 %v2499_v33, %v2475_v4  ;;  %v2506_v11 = vmul.f32 0.7978845, %v2502_v32 }
0x103b   :  { %3203 = vtanh.f32 %v2508_v43  ;;  %v2509_v12 = vmul.f32 0.7978845, %v2505_v9 }
0x103c   :  { %v2507_v14 = vmul.f32 0.7978845, %v2503_v10  ;;  %3205 = vtanh.f32 %v2506_v11 }
0x103d   :  { %3207 = vtanh.f32 %v2509_v12 }
0x103e   :  { %3209 = vtanh.f32 %v2507_v14 }
0x1045   :  { %v3204_v15 = vpop.eup %3203 }
0x1046   :  { %v3206_v16 = vpop.eup %3205  ;;  %v2516_v18 = vadd.f32 1.0, %v3204_v15 }
0x1047   :  { %v3208_v21 = vpop.eup %3207  ;;  %v2514_v22 = vadd.f32 1.0, %v3206_v16 }
0x1048   :  { %v3210_v23 = vpop.eup %3209  ;;  %v2517_v28 = vadd.f32 1.0, %v3208_v21  ;;  %v2520_v37 = vmul.f32 %v2516_v18, %v2488_v25 }
0x1049   :  { %v2515_v36 = vadd.f32 1.0, %v3210_v23  ;;  %v2518_v44 = vmul.f32 %v2514_v22, %v2486_v30 }
0x104a   :  { %v2521_v39 = vmul.f32 %v2517_v28, %v2489_v26 }
0x104b   :  { %v2519_v45 = vmul.f32 %v2515_v36, %v2487_v34 }
0x104c   :  { %v2523_v46 = vpack.c.bf16 %v2521_v39, %v2520_v37 }
0x104d   :  { %v2522_v24 = vpack.c.bf16 %v2519_v45, %v2518_v44 }
0x104f   :  { %3084 = vmatprep.mubr.bf16.mxu1 %v2522_v24 }
0x1050   :  { %3085 = vmatmul.mubr.bf16.vlgmr.msra.gmra.mrb[68].mxu1 %v2523_v46 }
0x1123   :  { %v3086_v40 = vpop.f32.mrb[68].mxu1 }
0x1124   :  { %v2638_v48 = vadd.f32 %v3086_v40, %v2733_v29  ;;  %v2629_v57 = vpop.f32.mrb[69].mxu1 }
0x1125   :  { %v2630_v42 = vadd.f32 %v2733_v29, %v2629_v57  ;;  %v3087_v35 = vpop.f32.mrb[70].mxu1 }
0x1126   :  { %v2646_v49 = vadd.f32 %v2638_v48, %v3995_v61  ;;  %v2641_v50 = vadd.f32 %v3087_v35, %v2733_v29  ;;  %v2632_v51 = vpop.f32.mrb[71].mxu1 }
0x1127   :  { %v2644_v38 = vadd.f32 %v2630_v42, %v3990_v47  ;;  %v2633_v1 = vadd.f32 %v2733_v29, %v2632_v51 }
0x1128   :  { %2650 = vst.msk [vmem:[#allocation15 + $0x10] sm:$0xff] %vm145_vm0, %v2646_v49  ;;  %v2647_v19 = vadd.f32 %v2641_v50, %v4009_v52 }
0x1129   :  { %2648 = vst.msk [vmem:[#allocation15] sm:$0xff] %vm145_vm0, %v2644_v38  ;;  %v2645_v20 = vadd.f32 %v2633_v1, %v4000_v62 }
0x112a   :  { %2651 = vst.msk [vmem:[#allocation15 + $0x18] sm:$0xff] %vm145_vm0, %v2647_v19 }
0x112b   :  { %2649 = vst.msk [vmem:[#allocation15 + $0x8] sm:$0xff] %vm145_vm0, %v2645_v20 }
0x112c   :  { %3380 = shalt.err (!%p3377_p4)
}
0x112d   :  { %s3381_s8 = scalar_lea.hbm %s4099_s17, 512 }
0x112e   :  { %p3382_p5 = scmp.ne.s32.totalorder %s4099_s17, %s3381_s8  ;;  %p3385_p6 = scmp.lt.u32.totalorder %s3381_s8, %s4099_s17 }
0x1130   :  { %p3387_p7 = pnand %p3385_p6, %p3382_p5 }
0x1132   :  { %3390 = shalt.err (!%p3387_p7)
}
0x1133   :  { %s3417_s10 = smov 128  }
0x1134   :  { %2663 = dma.vmem_to_hbm [thread:$0]  %s2658_s23, 512, %s4099_s17, [#allocation5], %s3417_s10, %s3417_s10, %s3413_s19  }
0x1135   :  { %3399 = dma.done.wait [#allocation5], 512  }
0x1136   :  { %3400 = vsyncadd [#allocation5], 4294966784 }
0x1137   :  { %2667 = vsyncpa [#allocation4], 1 }
0x1138   :  { %2668 = vsyncpa [#allocation7], 1 }
0x1139   :  { %2669 = vsyncpa [#allocation10], 1 }
0x113a   :  { %2670 = vsyncpa [#allocation13], 1 }
0x113b   :  { %2671 = vsyncpa [#allocation5], 1 }

</bundles_post_ra>
